<compile_context>
chip_gen: v5e
topology: v5e:2x2
jax: 0.10.0
libtpu: 0.0.40
codegen_flags: <defaults>
</compile_context>

<pallas_src>
import jax
import jax.numpy as jnp
from jax.experimental import pallas as pl
from jax.experimental.pallas import tpu as pltpu

C_OUT = 8          # conv output channels
KH = KW = 3        # conv kernel size
EPS = 1e-5         # BatchNorm eps
FC1, FC2, FC3 = 512, 128, 1


# ---------------------------------------------------------------------------
# Single fused kernel: conv(+pool) matmul -> BN -> fc1 -> relu -> fc2 -> relu -> fc3
# ---------------------------------------------------------------------------
def fused_kernel(patches_ref, wconv_ref, cbias_ref, gamma_ref, beta_ref,
                 w1_hbm, b1_ref, w2_hbm, b2_ref, w3_ref, b3_ref,
                 out_ref, w1_vmem, w2_vmem, dma_sem):
    # Kick off the big fc-weight DMAs immediately so they overlap conv/pool/BN.
    cp1 = pltpu.make_async_copy(w1_hbm, w1_vmem, dma_sem.at[0])
    cp2 = pltpu.make_async_copy(w2_hbm, w2_vmem, dma_sem.at[1])
    cp1.start()
    cp2.start()

    B = patches_ref.shape[0]
    n_sp = patches_ref.shape[2]           # Hp * Wp

    # Conv(1->8,3x3,pad=1) fused with MaxPool(2,2):
    #   wconv: (4*C, 16), row (p*C + c) = channel-c 3x3 filter embedded at pool
    #   phase p=(di,dj) inside a 4x4 window.
    #   patches[b]: (16, Hp*Wp) stride-2 im2col over 4x4 windows.
    # One (32,16)@(16,Hp*Wp) MXU matmul per sample; max over the 4 phase blocks
    # is exactly the 2x2/stride-2 max pool.  Bias is added after the max
    # (max(a+b, c+b) == max(a,c)+b).
    conv_b = [jnp.dot(wconv_ref[...], patches_ref[b],
                      preferred_element_type=jnp.float32) for b in range(B)]
    conv_all = jnp.stack(conv_b, axis=0)                    # (B, 4*C, Hp*Wp)
    pooled = jnp.maximum(
        jnp.maximum(conv_all[:, 0 * C_OUT:1 * C_OUT, :],
                    conv_all[:, 1 * C_OUT:2 * C_OUT, :]),
        jnp.maximum(conv_all[:, 2 * C_OUT:3 * C_OUT, :],
                    conv_all[:, 3 * C_OUT:4 * C_OUT, :]),
    ) + cbias_ref[...]                                      # (B, C, Hp*Wp)

    # BatchNorm2d, training-mode batch statistics (biased variance), vectorized
    # over channels: per-channel stats over (B, Hp, Wp).
    n = float(B * n_sp)
    s1 = jnp.sum(jnp.sum(pooled, axis=2, keepdims=True), axis=0, keepdims=True)
    mean = s1 / n                                           # (1, C, 1)
    cen = pooled - mean
    s2 = jnp.sum(jnp.sum(cen * cen, axis=2, keepdims=True), axis=0, keepdims=True)
    inv_std = jax.lax.rsqrt(s2 / n + EPS)                   # (1, C, 1)
    bn = cen * (gamma_ref[...] * inv_std) + beta_ref[...]   # (B, C, Hp*Wp)

    # fc1: contract over the 640 = C*(Hp*Wp) flattened features.  w1 is staged
    # as (C, Hp*Wp, 512), so each channel is a clean 2-D MXU matmul; accumulate
    # in f32.  The flatten order matches torch: feature = c*(Hp*Wp) + spatial.
    cp1.wait()                                              # w1 now in VMEM
    h = jnp.dot(bn[:, 0, :], w1_vmem[0], preferred_element_type=jnp.float32)
    for c in range(1, C_OUT):
        h = h + jnp.dot(bn[:, c, :], w1_vmem[c],
                        preferred_element_type=jnp.float32)
    h = jnp.maximum(h + b1_ref[...], 0.0)                   # (B, 512)

    # fc2 -> relu
    cp2.wait()                                              # w2 now in VMEM
    h = jnp.dot(h, w2_vmem[...], preferred_element_type=jnp.float32) + b2_ref[...]
    h = jnp.maximum(h, 0.0)                                 # (B, 128)

    # fc3 has a single output unit: lane reduction instead of an N=1 matmul.
    out_ref[...] = jnp.sum(h * w3_ref[...], axis=-1, keepdims=True) + b3_ref[...]


def _vmem():
    return pl.BlockSpec(memory_space=pltpu.MemorySpace.VMEM)


# ---------------------------------------------------------------------------
# Forward wrapper: host-side input im2col + the single fused pallas_call.
# ---------------------------------------------------------------------------
def net_forward(x, pp):
    B, H, W = x.shape
    Hp, Wp = H // 2, W // 2

    # Stride-2 im2col of the zero-padded input over 4x4 windows (one window per
    # pooled output position).  Tiny (10 KiB) pure-layout prep, fused by XLA.
    xpad = jnp.pad(x, ((0, 0), (1, 1), (1, 1)))             # (B, H+2, W+2)
    cols = []
    for oi in range(4):
        for oj in range(4):
            cols.append(
                xpad[:, oi:oi + 2 * Hp:2, oj:oj + 2 * Wp:2].reshape(B, Hp * Wp))
    patches = jnp.stack(cols, axis=1)                       # (B, 16, Hp*Wp)

    return pl.pallas_call(
        fused_kernel,
        out_shape=jax.ShapeDtypeStruct((B, 1), jnp.float32),
        in_specs=[
            _vmem(),                              # patches
            _vmem(),                              # wconv (32,16)
            _vmem(),                              # conv bias (1,C,1)
            _vmem(),                              # bn gamma (1,C,1)
            _vmem(),                              # bn beta (1,C,1)
            pl.BlockSpec(memory_space=pl.ANY),    # w1 stays in HBM, manual DMA
            _vmem(),                              # b1 (1,512)
            pl.BlockSpec(memory_space=pl.ANY),    # w2 stays in HBM, manual DMA
            _vmem(),                              # b2 (1,128)
            _vmem(),                              # w3 (1,128)
            _vmem(),                              # b3 (1,1)
        ],
        out_specs=_vmem(),
        scratch_shapes=[
            pltpu.VMEM((C_OUT, Hp * Wp, FC1), jnp.float32),   # w1 staging
            pltpu.VMEM((FC1, FC2), jnp.float32),              # w2 staging
            pltpu.SemaphoreType.DMA((2,)),
        ],
    )(patches, pp["wconv"], pp["cbias"], pp["gamma"], pp["beta"],
      pp["w1"], pp["b1"], pp["w2"], pp["b2"], pp["w3"], pp["b3"])


# ---------------------------------------------------------------------------
# Parameters: torch-layout init + one-time repack into kernel-friendly layouts.
# ---------------------------------------------------------------------------
def init_params(key):
    ks = jax.random.split(key, 8)

    def u(k, shape, fan_in):
        bound = 1.0 / (fan_in ** 0.5)
        return jax.random.uniform(k, shape, jnp.float32, -bound, bound)

    return {
        "conv_w": u(ks[0], (C_OUT, 1, KH, KW), KH * KW),
        "conv_b": u(ks[1], (C_OUT,), KH * KW),
        "bn_gamma": jnp.ones((C_OUT,), jnp.float32),
        "bn_beta": jnp.zeros((C_OUT,), jnp.float32),
        "fc1_w": u(ks[2], (FC1, 640), 640),       # torch layout (out, in)
        "fc1_b": u(ks[3], (FC1,), 640),
        "fc2_w": u(ks[4], (FC2, FC1), FC1),
        "fc2_b": u(ks[5], (FC2,), FC1),
        "fc3_w": u(ks[6], (FC3, FC2), FC2),
        "fc3_b": u(ks[7], (FC3,), FC2),
    }


def pack_params(p):
    """One-time host repack of torch-layout params into kernel layouts."""
    w = p["conv_w"].reshape(C_OUT, KH, KW)
    # Embed the 3x3 filter at each of the 4 pool-phase offsets of a 4x4 window.
    wstack = jnp.zeros((2, 2, C_OUT, 4, 4), jnp.float32)
    for di in range(2):
        for dj in range(2):
            wstack = wstack.at[di, dj, :, di:di + KH, dj:dj + KW].set(w)
    wstack = wstack.reshape(4 * C_OUT, 16)        # row = (di*2+dj)*C + c
    return {
        "wconv": wstack,
        "cbias": p["conv_b"].reshape(1, C_OUT, 1),
        "gamma": p["bn_gamma"].reshape(1, C_OUT, 1),
        "beta": p["bn_beta"].reshape(1, C_OUT, 1),
        "w1": p["fc1_w"].T.reshape(C_OUT, 640 // C_OUT, FC1),  # (C, Hp*Wp, 512)
        "b1": p["fc1_b"].reshape(1, FC1),
        "w2": p["fc2_w"].T,                                    # (512, 128)
        "b2": p["fc2_b"].reshape(1, FC2),
        "w3": p["fc3_w"],                                      # (1, 128)
        "b3": p["fc3_b"].reshape(1, 1),
    }


# ---------------------------------------------------------------------------
# Pure-JAX reference (same math as the torch module in training mode).
# ---------------------------------------------------------------------------
def net_reference(x, p):
    hi = jax.lax.Precision.HIGHEST
    xi = x[:, None, :, :]
    conv = jax.lax.conv_general_dilated(
        xi, p["conv_w"], window_strides=(1, 1), padding=((1, 1), (1, 1)),
        dimension_numbers=("NCHW", "OIHW", "NCHW"), precision=hi)
    conv = conv + p["conv_b"][None, :, None, None]
    B, C, H, W = conv.shape
    pooled = conv.reshape(B, C, H // 2, 2, W // 2, 2).max(axis=(3, 5))
    mean = pooled.mean(axis=(0, 2, 3), keepdims=True)
    var = ((pooled - mean) ** 2).mean(axis=(0, 2, 3), keepdims=True)
    bn = (pooled - mean) * jax.lax.rsqrt(var + EPS)
    bn = bn * p["bn_gamma"][None, :, None, None] + p["bn_beta"][None, :, None, None]
    flat = bn.reshape(B, -1)
    h = jnp.maximum(jnp.dot(flat, p["fc1_w"].T, precision=hi) + p["fc1_b"], 0.0)
    h = jnp.maximum(jnp.dot(h, p["fc2_w"].T, precision=hi) + p["fc2_b"], 0.0)
    return jnp.dot(h, p["fc3_w"].T, precision=hi) + p["fc3_b"]


if __name__ == "__main__":
    key = jax.random.PRNGKey(0)
    kx, kp = jax.random.split(key)

    # x: (B, H, W) = (2, 16, 20)  ->  flatten size 8 * 8 * 10 = 640 (fc1 in_features)
    x = jax.random.normal(kx, (2, 16, 20), jnp.float32)
    params = init_params(kp)
    packed = pack_params(params)          # one-time repack, outside the hot path

    y = jax.block_until_ready(jax.jit(net_forward)(x, packed))
    assert y.shape == (2, 1) and y.dtype == jnp.float32

    y_ref = jax.block_until_ready(jax.jit(net_reference)(x, params))
    assert jnp.allclose(y, y_ref, atol=2e-2, rtol=2e-2), (y, y_ref)
    print("KERNEL_OK")
</pallas_src>

<mosaic_0001>
module attributes {stable_mosaic.version = 11 : i64} {
  func.func @fused_kernel(%arg0: memref<2x16x80xf32, #tpu.memory_space<vmem>>, %arg1: memref<32x16xf32, #tpu.memory_space<vmem>>, %arg2: memref<1x8x1xf32, #tpu.memory_space<vmem>>, %arg3: memref<1x8x1xf32, #tpu.memory_space<vmem>>, %arg4: memref<1x8x1xf32, #tpu.memory_space<vmem>>, %arg5: memref<8x80x512xf32, #tpu.memory_space<any>>, %arg6: memref<1x512xf32, #tpu.memory_space<vmem>>, %arg7: memref<512x128xf32, #tpu.memory_space<any>>, %arg8: memref<1x128xf32, #tpu.memory_space<vmem>>, %arg9: memref<1x128xf32, #tpu.memory_space<vmem>>, %arg10: memref<1x1xf32, #tpu.memory_space<vmem>>, %arg11: memref<2x1xf32, #tpu.memory_space<vmem>>, %arg12: memref<8x80x512xf32, #tpu.memory_space<vmem>>, %arg13: memref<512x128xf32, #tpu.memory_space<vmem>>, %arg14: memref<2x!tpu.dma_semaphore, #tpu.memory_space<semaphore_mem>>) attributes {dimension_semantics = [], scalar_prefetch = 0 : i64, scratch_operands = 3 : i64, tpu.core_type = #tpu.core_type<tc>} {
    %c0_i32 = arith.constant 0 : i32
    %0 = tpu.memref_slice %arg14[%c0_i32] : memref<2x!tpu.dma_semaphore, #tpu.memory_space<semaphore_mem>> -> memref<1x!tpu.dma_semaphore, #tpu.memory_space<semaphore_mem>>
    %1 = tpu.memref_squeeze %0 : memref<1x!tpu.dma_semaphore, #tpu.memory_space<semaphore_mem>> -> memref<!tpu.dma_semaphore, #tpu.memory_space<semaphore_mem>>
    tpu.enqueue_dma source(%arg5 : memref<8x80x512xf32, #tpu.memory_space<any>>) target(%arg12 : memref<8x80x512xf32, #tpu.memory_space<vmem>>) target_semaphore(%1 : memref<!tpu.dma_semaphore, #tpu.memory_space<semaphore_mem>>)
    %c1_i32 = arith.constant 1 : i32
    %2 = tpu.memref_slice %arg14[%c1_i32] : memref<2x!tpu.dma_semaphore, #tpu.memory_space<semaphore_mem>> -> memref<1x!tpu.dma_semaphore, #tpu.memory_space<semaphore_mem>>
    %3 = tpu.memref_squeeze %2 : memref<1x!tpu.dma_semaphore, #tpu.memory_space<semaphore_mem>> -> memref<!tpu.dma_semaphore, #tpu.memory_space<semaphore_mem>>
    tpu.enqueue_dma source(%arg7 : memref<512x128xf32, #tpu.memory_space<any>>) target(%arg13 : memref<512x128xf32, #tpu.memory_space<vmem>>) target_semaphore(%3 : memref<!tpu.dma_semaphore, #tpu.memory_space<semaphore_mem>>)
    %c0 = arith.constant 0 : index
    %c0_0 = arith.constant 0 : index
    %4 = vector.load %arg1[%c0, %c0_0] : memref<32x16xf32, #tpu.memory_space<vmem>>, vector<32x16xf32>
    %c0_1 = arith.constant 0 : index
    %c0_2 = arith.constant 0 : index
    %c0_3 = arith.constant 0 : index
    %5 = vector.load %arg0[%c0_1, %c0_2, %c0_3] : memref<2x16x80xf32, #tpu.memory_space<vmem>>, vector<1x16x80xf32>
    %6 = vector.shape_cast %5 : vector<1x16x80xf32> to vector<16x80xf32>
    %cst = arith.constant dense<0.000000e+00> : vector<32x80xf32>
    %7 = tpu.matmul %4, %6, %cst {dimension_numbers = #tpu.dot_dimension_numbers<[1], [0], [0], [1], [0, 0, 1, 1], [], []>} : vector<32x16xf32>, vector<16x80xf32>, vector<32x80xf32> -> vector<32x80xf32>
    %c0_4 = arith.constant 0 : index
    %c0_5 = arith.constant 0 : index
    %8 = vector.load %arg1[%c0_4, %c0_5] : memref<32x16xf32, #tpu.memory_space<vmem>>, vector<32x16xf32>
    %c1 = arith.constant 1 : index
    %c0_6 = arith.constant 0 : index
    %c0_7 = arith.constant 0 : index
    %9 = vector.load %arg0[%c1, %c0_6, %c0_7] : memref<2x16x80xf32, #tpu.memory_space<vmem>>, vector<1x16x80xf32>
    %10 = vector.shape_cast %9 : vector<1x16x80xf32> to vector<16x80xf32>
    %cst_8 = arith.constant dense<0.000000e+00> : vector<32x80xf32>
    %11 = tpu.matmul %8, %10, %cst_8 {dimension_numbers = #tpu.dot_dimension_numbers<[1], [0], [0], [1], [0, 0, 1, 1], [], []>} : vector<32x16xf32>, vector<16x80xf32>, vector<32x80xf32> -> vector<32x80xf32>
    %12 = vector.shape_cast %7 : vector<32x80xf32> to vector<1x32x80xf32>
    %13 = vector.shape_cast %11 : vector<32x80xf32> to vector<1x32x80xf32>
    %14 = tpu.concatenate %12, %13 in 0 : vector<1x32x80xf32>, vector<1x32x80xf32> -> vector<2x32x80xf32>
    %15 = vector.extract_strided_slice %14 {offsets = [0, 0, 0], sizes = [2, 8, 80], strides = [1, 1, 1]} : vector<2x32x80xf32> to vector<2x8x80xf32>
    %16 = vector.extract_strided_slice %14 {offsets = [0, 8, 0], sizes = [2, 8, 80], strides = [1, 1, 1]} : vector<2x32x80xf32> to vector<2x8x80xf32>
    %17 = arith.maximumf %15, %16 : vector<2x8x80xf32>
    %18 = vector.extract_strided_slice %14 {offsets = [0, 16, 0], sizes = [2, 8, 80], strides = [1, 1, 1]} : vector<2x32x80xf32> to vector<2x8x80xf32>
    %19 = vector.extract_strided_slice %14 {offsets = [0, 24, 0], sizes = [2, 8, 80], strides = [1, 1, 1]} : vector<2x32x80xf32> to vector<2x8x80xf32>
    %20 = arith.maximumf %18, %19 : vector<2x8x80xf32>
    %21 = arith.maximumf %17, %20 : vector<2x8x80xf32>
    %c0_9 = arith.constant 0 : index
    %c0_10 = arith.constant 0 : index
    %c0_11 = arith.constant 0 : index
    %22 = vector.load %arg2[%c0_9, %c0_10, %c0_11] : memref<1x8x1xf32, #tpu.memory_space<vmem>>, vector<1x8x1xf32>
    %23 = vector.broadcast %22 : vector<1x8x1xf32> to vector<2x8x80xf32>
    %24 = arith.addf %21, %23 : vector<2x8x80xf32>
    %cst_12 = arith.constant dense<0.000000e+00> : vector<2x8xf32>
    %25 = vector.multi_reduction <add>, %24, %cst_12 [2] : vector<2x8x80xf32> to vector<2x8xf32>
    %26 = vector.shape_cast %25 : vector<2x8xf32> to vector<2x8x1xf32>
    %cst_13 = arith.constant dense<0.000000e+00> : vector<8x1xf32>
    %27 = vector.multi_reduction <add>, %26, %cst_13 [0] : vector<2x8x1xf32> to vector<8x1xf32>
    %28 = vector.shape_cast %27 : vector<8x1xf32> to vector<1x8x1xf32>
    %cst_14 = arith.constant 1.600000e+02 : f32
    %29 = vector.broadcast %cst_14 : f32 to vector<1x8x1xf32>
    %30 = arith.divf %28, %29 : vector<1x8x1xf32>
    %31 = vector.broadcast %30 : vector<1x8x1xf32> to vector<2x8x80xf32>
    %32 = arith.subf %24, %31 : vector<2x8x80xf32>
    %33 = arith.mulf %32, %32 : vector<2x8x80xf32>
    %cst_15 = arith.constant dense<0.000000e+00> : vector<2x8xf32>
    %34 = vector.multi_reduction <add>, %33, %cst_15 [2] : vector<2x8x80xf32> to vector<2x8xf32>
    %35 = vector.shape_cast %34 : vector<2x8xf32> to vector<2x8x1xf32>
    %cst_16 = arith.constant dense<0.000000e+00> : vector<8x1xf32>
    %36 = vector.multi_reduction <add>, %35, %cst_16 [0] : vector<2x8x1xf32> to vector<8x1xf32>
    %37 = vector.shape_cast %36 : vector<8x1xf32> to vector<1x8x1xf32>
    %cst_17 = arith.constant 1.600000e+02 : f32
    %38 = vector.broadcast %cst_17 : f32 to vector<1x8x1xf32>
    %39 = arith.divf %37, %38 : vector<1x8x1xf32>
    %cst_18 = arith.constant 9.99999974E-6 : f32
    %40 = vector.broadcast %cst_18 : f32 to vector<1x8x1xf32>
    %41 = arith.addf %39, %40 : vector<1x8x1xf32>
    %42 = math.rsqrt %41 : vector<1x8x1xf32>
    %c0_19 = arith.constant 0 : index
    %c0_20 = arith.constant 0 : index
    %c0_21 = arith.constant 0 : index
    %43 = vector.load %arg3[%c0_19, %c0_20, %c0_21] : memref<1x8x1xf32, #tpu.memory_space<vmem>>, vector<1x8x1xf32>
    %44 = arith.mulf %43, %42 : vector<1x8x1xf32>
    %45 = vector.broadcast %44 : vector<1x8x1xf32> to vector<2x8x80xf32>
    %46 = arith.mulf %32, %45 : vector<2x8x80xf32>
    %c0_22 = arith.constant 0 : index
    %c0_23 = arith.constant 0 : index
    %c0_24 = arith.constant 0 : index
    %47 = vector.load %arg4[%c0_22, %c0_23, %c0_24] : memref<1x8x1xf32, #tpu.memory_space<vmem>>, vector<1x8x1xf32>
    %48 = vector.broadcast %47 : vector<1x8x1xf32> to vector<2x8x80xf32>
    %49 = arith.addf %46, %48 : vector<2x8x80xf32>
    %c0_i32_25 = arith.constant 0 : i32
    %50 = tpu.memref_slice %arg14[%c0_i32_25] : memref<2x!tpu.dma_semaphore, #tpu.memory_space<semaphore_mem>> -> memref<1x!tpu.dma_semaphore, #tpu.memory_space<semaphore_mem>>
    %51 = tpu.memref_squeeze %50 : memref<1x!tpu.dma_semaphore, #tpu.memory_space<semaphore_mem>> -> memref<!tpu.dma_semaphore, #tpu.memory_space<semaphore_mem>>
    tpu.wait_dma2 semaphore(%51 : memref<!tpu.dma_semaphore, #tpu.memory_space<semaphore_mem>>) src(%arg5 : memref<8x80x512xf32, #tpu.memory_space<any>>) dst(%arg12 : memref<8x80x512xf32, #tpu.memory_space<vmem>>)
    %52 = vector.extract_strided_slice %49 {offsets = [0, 0, 0], sizes = [2, 1, 80], strides = [1, 1, 1]} : vector<2x8x80xf32> to vector<2x1x80xf32>
    %53 = vector.shape_cast %52 : vector<2x1x80xf32> to vector<2x80xf32>
    %c0_26 = arith.constant 0 : index
    %c0_27 = arith.constant 0 : index
    %c0_28 = arith.constant 0 : index
    %54 = vector.load %arg12[%c0_26, %c0_27, %c0_28] : memref<8x80x512xf32, #tpu.memory_space<vmem>>, vector<1x80x512xf32>
    %55 = vector.shape_cast %54 : vector<1x80x512xf32> to vector<80x512xf32>
    %cst_29 = arith.constant dense<0.000000e+00> : vector<2x512xf32>
    %56 = tpu.matmul %53, %55, %cst_29 {dimension_numbers = #tpu.dot_dimension_numbers<[1], [0], [0], [1], [0, 0, 1, 1], [], []>} : vector<2x80xf32>, vector<80x512xf32>, vector<2x512xf32> -> vector<2x512xf32>
    %57 = vector.extract_strided_slice %49 {offsets = [0, 1, 0], sizes = [2, 1, 80], strides = [1, 1, 1]} : vector<2x8x80xf32> to vector<2x1x80xf32>
    %58 = vector.shape_cast %57 : vector<2x1x80xf32> to vector<2x80xf32>
    %c1_30 = arith.constant 1 : index
    %c0_31 = arith.constant 0 : index
    %c0_32 = arith.constant 0 : index
    %59 = vector.load %arg12[%c1_30, %c0_31, %c0_32] : memref<8x80x512xf32, #tpu.memory_space<vmem>>, vector<1x80x512xf32>
    %60 = vector.shape_cast %59 : vector<1x80x512xf32> to vector<80x512xf32>
    %cst_33 = arith.constant dense<0.000000e+00> : vector<2x512xf32>
    %61 = tpu.matmul %58, %60, %cst_33 {dimension_numbers = #tpu.dot_dimension_numbers<[1], [0], [0], [1], [0, 0, 1, 1], [], []>} : vector<2x80xf32>, vector<80x512xf32>, vector<2x512xf32> -> vector<2x512xf32>
    %62 = arith.addf %56, %61 : vector<2x512xf32>
    %63 = vector.extract_strided_slice %49 {offsets = [0, 2, 0], sizes = [2, 1, 80], strides = [1, 1, 1]} : vector<2x8x80xf32> to vector<2x1x80xf32>
    %64 = vector.shape_cast %63 : vector<2x1x80xf32> to vector<2x80xf32>
    %c2 = arith.constant 2 : index
    %c0_34 = arith.constant 0 : index
    %c0_35 = arith.constant 0 : index
    %65 = vector.load %arg12[%c2, %c0_34, %c0_35] : memref<8x80x512xf32, #tpu.memory_space<vmem>>, vector<1x80x512xf32>
    %66 = vector.shape_cast %65 : vector<1x80x512xf32> to vector<80x512xf32>
    %cst_36 = arith.constant dense<0.000000e+00> : vector<2x512xf32>
    %67 = tpu.matmul %64, %66, %cst_36 {dimension_numbers = #tpu.dot_dimension_numbers<[1], [0], [0], [1], [0, 0, 1, 1], [], []>} : vector<2x80xf32>, vector<80x512xf32>, vector<2x512xf32> -> vector<2x512xf32>
    %68 = arith.addf %62, %67 : vector<2x512xf32>
    %69 = vector.extract_strided_slice %49 {offsets = [0, 3, 0], sizes = [2, 1, 80], strides = [1, 1, 1]} : vector<2x8x80xf32> to vector<2x1x80xf32>
    %70 = vector.shape_cast %69 : vector<2x1x80xf32> to vector<2x80xf32>
    %c3 = arith.constant 3 : index
    %c0_37 = arith.constant 0 : index
    %c0_38 = arith.constant 0 : index
    %71 = vector.load %arg12[%c3, %c0_37, %c0_38] : memref<8x80x512xf32, #tpu.memory_space<vmem>>, vector<1x80x512xf32>
    %72 = vector.shape_cast %71 : vector<1x80x512xf32> to vector<80x512xf32>
    %cst_39 = arith.constant dense<0.000000e+00> : vector<2x512xf32>
    %73 = tpu.matmul %70, %72, %cst_39 {dimension_numbers = #tpu.dot_dimension_numbers<[1], [0], [0], [1], [0, 0, 1, 1], [], []>} : vector<2x80xf32>, vector<80x512xf32>, vector<2x512xf32> -> vector<2x512xf32>
    %74 = arith.addf %68, %73 : vector<2x512xf32>
    %75 = vector.extract_strided_slice %49 {offsets = [0, 4, 0], sizes = [2, 1, 80], strides = [1, 1, 1]} : vector<2x8x80xf32> to vector<2x1x80xf32>
    %76 = vector.shape_cast %75 : vector<2x1x80xf32> to vector<2x80xf32>
    %c4 = arith.constant 4 : index
    %c0_40 = arith.constant 0 : index
    %c0_41 = arith.constant 0 : index
    %77 = vector.load %arg12[%c4, %c0_40, %c0_41] : memref<8x80x512xf32, #tpu.memory_space<vmem>>, vector<1x80x512xf32>
    %78 = vector.shape_cast %77 : vector<1x80x512xf32> to vector<80x512xf32>
    %cst_42 = arith.constant dense<0.000000e+00> : vector<2x512xf32>
    %79 = tpu.matmul %76, %78, %cst_42 {dimension_numbers = #tpu.dot_dimension_numbers<[1], [0], [0], [1], [0, 0, 1, 1], [], []>} : vector<2x80xf32>, vector<80x512xf32>, vector<2x512xf32> -> vector<2x512xf32>
    %80 = arith.addf %74, %79 : vector<2x512xf32>
    %81 = vector.extract_strided_slice %49 {offsets = [0, 5, 0], sizes = [2, 1, 80], strides = [1, 1, 1]} : vector<2x8x80xf32> to vector<2x1x80xf32>
    %82 = vector.shape_cast %81 : vector<2x1x80xf32> to vector<2x80xf32>
    %c5 = arith.constant 5 : index
    %c0_43 = arith.constant 0 : index
    %c0_44 = arith.constant 0 : index
    %83 = vector.load %arg12[%c5, %c0_43, %c0_44] : memref<8x80x512xf32, #tpu.memory_space<vmem>>, vector<1x80x512xf32>
    %84 = vector.shape_cast %83 : vector<1x80x512xf32> to vector<80x512xf32>
    %cst_45 = arith.constant dense<0.000000e+00> : vector<2x512xf32>
    %85 = tpu.matmul %82, %84, %cst_45 {dimension_numbers = #tpu.dot_dimension_numbers<[1], [0], [0], [1], [0, 0, 1, 1], [], []>} : vector<2x80xf32>, vector<80x512xf32>, vector<2x512xf32> -> vector<2x512xf32>
    %86 = arith.addf %80, %85 : vector<2x512xf32>
    %87 = vector.extract_strided_slice %49 {offsets = [0, 6, 0], sizes = [2, 1, 80], strides = [1, 1, 1]} : vector<2x8x80xf32> to vector<2x1x80xf32>
    %88 = vector.shape_cast %87 : vector<2x1x80xf32> to vector<2x80xf32>
    %c6 = arith.constant 6 : index
    %c0_46 = arith.constant 0 : index
    %c0_47 = arith.constant 0 : index
    %89 = vector.load %arg12[%c6, %c0_46, %c0_47] : memref<8x80x512xf32, #tpu.memory_space<vmem>>, vector<1x80x512xf32>
    %90 = vector.shape_cast %89 : vector<1x80x512xf32> to vector<80x512xf32>
    %cst_48 = arith.constant dense<0.000000e+00> : vector<2x512xf32>
    %91 = tpu.matmul %88, %90, %cst_48 {dimension_numbers = #tpu.dot_dimension_numbers<[1], [0], [0], [1], [0, 0, 1, 1], [], []>} : vector<2x80xf32>, vector<80x512xf32>, vector<2x512xf32> -> vector<2x512xf32>
    %92 = arith.addf %86, %91 : vector<2x512xf32>
    %93 = vector.extract_strided_slice %49 {offsets = [0, 7, 0], sizes = [2, 1, 80], strides = [1, 1, 1]} : vector<2x8x80xf32> to vector<2x1x80xf32>
    %94 = vector.shape_cast %93 : vector<2x1x80xf32> to vector<2x80xf32>
    %c7 = arith.constant 7 : index
    %c0_49 = arith.constant 0 : index
    %c0_50 = arith.constant 0 : index
    %95 = vector.load %arg12[%c7, %c0_49, %c0_50] : memref<8x80x512xf32, #tpu.memory_space<vmem>>, vector<1x80x512xf32>
    %96 = vector.shape_cast %95 : vector<1x80x512xf32> to vector<80x512xf32>
    %cst_51 = arith.constant dense<0.000000e+00> : vector<2x512xf32>
    %97 = tpu.matmul %94, %96, %cst_51 {dimension_numbers = #tpu.dot_dimension_numbers<[1], [0], [0], [1], [0, 0, 1, 1], [], []>} : vector<2x80xf32>, vector<80x512xf32>, vector<2x512xf32> -> vector<2x512xf32>
    %98 = arith.addf %92, %97 : vector<2x512xf32>
    %c0_52 = arith.constant 0 : index
    %c0_53 = arith.constant 0 : index
    %99 = vector.load %arg6[%c0_52, %c0_53] : memref<1x512xf32, #tpu.memory_space<vmem>>, vector<1x512xf32>
    %100 = vector.broadcast %99 : vector<1x512xf32> to vector<2x512xf32>
    %101 = arith.addf %98, %100 : vector<2x512xf32>
    %cst_54 = arith.constant 0.000000e+00 : f32
    %102 = vector.broadcast %cst_54 : f32 to vector<2x512xf32>
    %103 = arith.maximumf %101, %102 : vector<2x512xf32>
    %c1_i32_55 = arith.constant 1 : i32
    %104 = tpu.memref_slice %arg14[%c1_i32_55] : memref<2x!tpu.dma_semaphore, #tpu.memory_space<semaphore_mem>> -> memref<1x!tpu.dma_semaphore, #tpu.memory_space<semaphore_mem>>
    %105 = tpu.memref_squeeze %104 : memref<1x!tpu.dma_semaphore, #tpu.memory_space<semaphore_mem>> -> memref<!tpu.dma_semaphore, #tpu.memory_space<semaphore_mem>>
    tpu.wait_dma2 semaphore(%105 : memref<!tpu.dma_semaphore, #tpu.memory_space<semaphore_mem>>) src(%arg7 : memref<512x128xf32, #tpu.memory_space<any>>) dst(%arg13 : memref<512x128xf32, #tpu.memory_space<vmem>>)
    %c0_56 = arith.constant 0 : index
    %c0_57 = arith.constant 0 : index
    %106 = vector.load %arg13[%c0_56, %c0_57] : memref<512x128xf32, #tpu.memory_space<vmem>>, vector<512x128xf32>
    %cst_58 = arith.constant dense<0.000000e+00> : vector<2x128xf32>
    %107 = tpu.matmul %103, %106, %cst_58 {dimension_numbers = #tpu.dot_dimension_numbers<[1], [0], [0], [1], [0, 0, 1, 1], [], []>} : vector<2x512xf32>, vector<512x128xf32>, vector<2x128xf32> -> vector<2x128xf32>
    %c0_59 = arith.constant 0 : index
    %c0_60 = arith.constant 0 : index
    %108 = vector.load %arg8[%c0_59, %c0_60] : memref<1x128xf32, #tpu.memory_space<vmem>>, vector<1x128xf32>
    %109 = vector.broadcast %108 : vector<1x128xf32> to vector<2x128xf32>
    %110 = arith.addf %107, %109 : vector<2x128xf32>
    %cst_61 = arith.constant 0.000000e+00 : f32
    %111 = vector.broadcast %cst_61 : f32 to vector<2x128xf32>
    %112 = arith.maximumf %110, %111 : vector<2x128xf32>
    %c0_62 = arith.constant 0 : index
    %c0_63 = arith.constant 0 : index
    %113 = vector.load %arg9[%c0_62, %c0_63] : memref<1x128xf32, #tpu.memory_space<vmem>>, vector<1x128xf32>
    %114 = vector.broadcast %113 : vector<1x128xf32> to vector<2x128xf32>
    %115 = arith.mulf %112, %114 : vector<2x128xf32>
    %cst_64 = arith.constant dense<0.000000e+00> : vector<2xf32>
    %116 = vector.multi_reduction <add>, %115, %cst_64 [1] : vector<2x128xf32> to vector<2xf32>
    %117 = vector.shape_cast %116 : vector<2xf32> to vector<2x1xf32>
    %c0_65 = arith.constant 0 : index
    %c0_66 = arith.constant 0 : index
    %118 = vector.load %arg10[%c0_65, %c0_66] : memref<1x1xf32, #tpu.memory_space<vmem>>, vector<1x1xf32>
    %119 = vector.broadcast %118 : vector<1x1xf32> to vector<2x1xf32>
    %120 = arith.addf %117, %119 : vector<2x1xf32>
    %c0_67 = arith.constant 0 : index
    %c0_68 = arith.constant 0 : index
    %121 = vector.load %arg11[%c0_67, %c0_68] : memref<2x1xf32, #tpu.memory_space<vmem>>, vector<2x1xf32>
    tpu.vector_store %arg11[%c0_67, %c0_68], %120 {strides = array<i32>} : memref<2x1xf32, #tpu.memory_space<vmem>>, vector<2x1xf32>,
    return
  }
}

</mosaic_0001>

<bundles_post_ra>
// kernel: net_forward.1
= control target key start
LH: loop header
LB: loop body
LE: loop exit
PB: predicated region body
PF: predicated region fallthrough
CT: control target
= control target key end

     0   :  { %s1902_s0 = inlined_call_operand.vmem [shape: f32[2,16,80], index: 0, kind: input, shape index: {}]   ;;  %s1903_s1 = inlined_call_operand.vmem [shape: f32[32,16], index: 1, kind: input, shape index: {}]   ;;  %s1904_s2 = inlined_call_operand.vmem [shape: f32[1,8,1], index: 2, kind: input, shape index: {}]   ;;  %s1905_s3 = inlined_call_operand.vmem [shape: f32[1,8,1], index: 3, kind: input, shape index: {}]   ;;  %s1906_s4 = inlined_call_operand.vmem [shape: f32[1,8,1], index: 4, kind: input, shape index: {}]   ;;  %s1907_s5 = inlined_call_operand.hbm [shape: f32[8,80,512], index: 5, kind: input, shape index: {}]   ;;  %s1908_s6 = inlined_call_operand.hbm [shape: f32[1,512], index: 6, kind: input, shape index: {}]   ;;  %s1909_s7 = inlined_call_operand.hbm [shape: f32[512,128], index: 7, kind: input, shape index: {}]   ;;  %s1910_s8 = inlined_call_operand.hbm [shape: f32[1,128], index: 8, kind: input, shape index: {}]   ;;  %s1911_s9 = inlined_call_operand.hbm [shape: f32[1,128], index: 9, kind: input, shape index: {}]   ;;  %s1912_s10 = inlined_call_operand.<no memory space> [shape: f32[1,1], index: 10, kind: input, shape index: {}]   ;;  %s1913_s11 = inlined_call_operand.vmem [shape: f32[2,1], index: 11, kind: output, shape index: {}]  }
   0x1   :  { %v16_v0 = vstv %s1912_s10 }
   0x2   :  { %17 = vst [vmem:[#allocation5] sm:$0x1] %v16_v0 }
   0x3   :  { %18 = vsyncpa [#allocation7], 0 }
   0x4   :  { %19 = vsyncpa [#allocation9], 0  ;;  %s46_s21 = sshll.u32 %s1910_s8, 4  ;;  %s1689_s22 = smov [#allocation8]   ;;  %s47_s21 = int_to_ptr.hbm [resolvable:$true] %s46_s21 }
   0x5   :  { %s48_s23 = sshll.u32 %s1689_s22, 4  ;;  %s35_s26 = sshll.u32 %s1908_s6, 4  ;;  %s49_s23 = int_to_ptr.vmem [resolvable:$true] %s48_s23  ;;  %s36_s26 = int_to_ptr.hbm [resolvable:$true] %s35_s26 }
   0x6   :  { %51 = dma.hbm_to_vmem [thread:$0]  %s47_s21, 16, %s49_s23, [#allocation9]  }
   0x7   :  { %s1690_s27 = smov [#allocation6]   ;;  %s57_s30 = sshll.u32 %s1911_s9, 4  ;;  %s58_s30 = int_to_ptr.hbm [resolvable:$true] %s57_s30 }
   0x8   :  { %s37_s28 = sshll.u32 %s1690_s27, 4  ;;  %s1691_s8 = smov [#allocation10]   ;;  %s38_s28 = int_to_ptr.vmem [resolvable:$true] %s37_s28 }
   0x9   :  { %40 = dma.hbm_to_vmem [thread:$0]  %s36_s26, 64, %s38_s28, [#allocation7]  }
   0xa   :  { %s59_s12 = sshll.u32 %s1691_s8, 4  ;;  %s60_s12 = int_to_ptr.vmem [resolvable:$true] %s59_s12 }
   0xb   :  { %62 = dma.hbm_to_vmem [thread:$0]  %s58_s30, 16, %s60_s12, [#allocation9]  }
   0xc   :  { %1681 = dma.done.wait [#allocation7], 64  }
   0xd   :  { %1682 = vsyncadd [#allocation7], 4294967232 }
   0xe   :  { %1683 = dma.done.wait [#allocation9], 32  }
   0xf   :  { %1684 = vsyncadd [#allocation9], 4294967264  ;;  %v1692_v1 = vmov 0   ;;  %v109_v2 = vld [vmem:[%s1902_s0 + $0x8] sm:$0xff]  ;;  %v1501_v3 = vld [vmem:[%s1902_s0 + $0x18] sm:$0xff]  ;;  %vm110_vm0 = vcmask 130048  }
  0x10   :  { %1551 = vset.pattern.permute.xlu0 %v1692_v1  ;;  %1553 = vset.pattern.permute.xlu1 %v1692_v1  ;;  %v108_v4 = vld [vmem:[%s1902_s0] sm:$0xff]  ;;  %v1500_v5 = vld [vmem:[%s1902_s0 + $0x10] sm:$0xff]  ;;  %v107_v7 = vld [vmem:[%s1903_s1 + $0x18] sm:$0xff]  ;;  %vm198_vm1 = vcmask 654336   ;;  %v1693_v30 = vmov 160.0   ;;  %s84_s29 = sshll.u32 %s1907_s5, 4  ;;  %s85_s29 = int_to_ptr.hbm [resolvable:$true] %s84_s29 }
  0x11   :  { %1552 = vset.pattern.permute.xlu2 %v1692_v1  ;;  %137 = vmatpush.msra.mxu0 %v109_v2  ;;  %v104_v6 = vld [vmem:[%s1903_s1] sm:$0xff]  ;;  %v105_v9 = vld [vmem:[%s1903_s1 + $0x8] sm:$0xff]  ;;  %v106_v10 = vld [vmem:[%s1903_s1 + $0x10] sm:$0xff]  ;;  %1554 = vrcp.f32 %v1693_v30  ;;  %s1694_s30 = smov [#allocation2]   ;;  %s98_s13 = sshll.u32 %s1909_s7, 4  ;;  %s99_s13 = int_to_ptr.hbm [resolvable:$true] %s98_s13 }
  0x12   :  { %169 = vmatpush.msra.mxu1 %v1501_v3  ;;  %1540 = vmatpush.msra.mxu2 %v109_v2  ;;  %v190_v8 = vld [vmem:[%s1904_s2] sm:$0xff]  ;;  %s86_s8 = sshll.u32 %s1694_s30, 4  ;;  %s1695_s9 = smov [#allocation3]   ;;  %s87_s8 = int_to_ptr.vmem [resolvable:$true] %s86_s8 }
  0x13   :  { %1542 = vmatpush.msra.mxu3 %v1501_v3  ;;  %138 = vmatpush.msra.mxu0 %v108_v4  ;;  %v246_v47 = vld [vmem:[%s1906_s4] sm:$0xff]  ;;  %89 = dma.hbm_to_vmem [thread:$0]  %s85_s29, 40960, %s87_s8, [#allocation4] }
  0x14   :  { %170 = vmatpush.msra.mxu1 %v1500_v5  ;;  %1496 = vmatmul.msk.f32.vlgmr.msra.gmra.mxu0 %vm110_vm0, %v104_v6  ;;  %s100_s14 = sshll.u32 %s1695_s9, 4  ;;  %v237_v59 = vld [vmem:[%s1905_s3] sm:$0xff]  ;;  %s101_s14 = int_to_ptr.vmem [resolvable:$true] %s100_s14 }
  0x15   :  { %1502 = vmatmul.msk.f32.vlgmr.msra.gmra.mxu1 %vm110_vm0, %v104_v6  ;;  %1541 = vmatpush.msra.mxu2 %v108_v4  ;;  %103 = dma.hbm_to_vmem [thread:$0]  %s99_s13, 8192, %s101_s14, [#allocation4 + $0x1] }
  0x16   :  { %1543 = vmatpush.msra.mxu3 %v1500_v5  ;;  %1499 = vmatmul.msk.f32.vlgmr.msra.gmra.mxu2 %vm110_vm0, %v107_v7 }
  0x17   :  { %1505 = vmatmul.msk.f32.vlgmr.msra.gmra.mxu3 %vm110_vm0, %v107_v7  ;;  %193 = vperm.xlu0 %1551, %v190_v8   ;;  %v1555_v31 = vpop.eup %1554 }
  0x18   :  { %v207_v32 = vmul.f32 160.0, %v1555_v31  ;;  %vm211_vm2 = vweird.f32 %v1555_v31 }
  0x1a   :  { %v208_v33 = vsub.f32 1.0, %v207_v32 }
  0x1c   :  { %1497 = vmatmul.msk.f32.gmra.mxu0 %vm110_vm0, %v105_v9  ;;  %v209_v34 = vmul.f32 %v1555_v31, %v208_v33 }
  0x1d   :  { %1503 = vmatmul.msk.f32.gmra.mxu1 %vm110_vm0, %v105_v9 }
  0x1e   :  { %v210_v35 = vadd.f32 %v1555_v31, %v209_v34 }
  0x20   :  { %v212_v37 = vsel %vm211_vm2, %v1555_v31, %v210_v35 }
  0x24   :  { %1498 = vmatmul.msk.f32.gmra.mxu0 %vm110_vm0, %v106_v10 }
  0x25   :  { %1504 = vmatmul.msk.f32.gmra.mxu1 %vm110_vm0, %v106_v10 }
  0x89   :  { %v194_v23 = vpop.permute.xlu0 %193 }
  0x91   :  { %v140_v11 = vpop.f32.mrf.mxu0 }
  0x92   :  { %v172_v12 = vpop.f32.mrf.mxu1 }
  0x99   :  { %v143_v13 = vpop.f32.mrf.mxu0  ;;  %v149_v15 = vpop.f32.mrf.mxu2 }
  0x9a   :  { %v175_v14 = vpop.f32.mrf.mxu1  ;;  %v181_v16 = vpop.f32.mrf.mxu3  ;;  %v184_v19 = vmax.f32 %v140_v11, %v143_v13 }
  0x9b   :  { %v185_v20 = vmax.f32 %v172_v12, %v175_v14 }
  0xa1   :  { %v146_v17 = vpop.f32.mrf.mxu0 }
  0xa2   :  { %v178_v18 = vpop.f32.mrf.mxu1  ;;  %v186_v21 = vmax.f32 %v146_v17, %v149_v15 }
  0xa3   :  { %v187_v22 = vmax.f32 %v178_v18, %v181_v16 }
  0xa4   :  { %v188_v24 = vmax.f32 %v184_v19, %v186_v21 }
  0xa5   :  { %v189_v25 = vmax.f32 %v185_v20, %v187_v22 }
  0xa6   :  { %v196_v26 = vadd.f32 %v194_v23, %v188_v24 }
  0xa7   :  { %v197_v27 = vadd.f32 %v194_v23, %v189_v25 }
  0xa8   :  { %v199_v29 = vsel %vm198_vm1, %v196_v26, 0.0 }
  0xa9   :  { %v202_v28 = vsel %vm198_vm1, %v197_v27, 0.0  ;;  %200 = vadd.xlane.f32.xlu0 %v199_v29 }
  0xaa   :  { %203 = vadd.xlane.f32.xlu1 %v202_v28 }
 0x11c   :  { %v201_v38 = vpop.xlane.xlu0 %200 }
 0x11d   :  { %v204_v36 = vpop.xlane.xlu1 %203 }
 0x11e   :  { %v205_v39 = vadd.f32 %v204_v36, %v201_v38 }
 0x120   :  { %v213_v40 = vmul.f32 %v212_v37, %v205_v39 }
 0x122   :  { %v215_v41 = vsub.f32 %v197_v27, %v213_v40  ;;  %v214_v42 = vsub.f32 %v196_v26, %v213_v40 }
 0x124   :  { %v217_v43 = vmul.f32 %v215_v41, %v215_v41  ;;  %v216_v44 = vmul.f32 %v214_v42, %v214_v42 }
 0x126   :  { %v221_v45 = vsel %vm198_vm1, %v217_v43, 0.0  ;;  %v218_v46 = vsel %vm198_vm1, %v216_v44, 0.0 }
 0x127   :  { %222 = vadd.xlane.f32.xlu2 %v221_v45  ;;  %219 = vadd.xlane.f32.xlu1 %v218_v46 }
 0x140   :  { %249 = vperm.xlu1 %1553, %v246_v47  }
 0x19a   :  { %v223_v48 = vpop.xlane.xlu2 %222  ;;  %v220_v49 = vpop.xlane.xlu1 %219 }
 0x19b   :  { %v224_v50 = vadd.f32 %v223_v48, %v220_v49 }
 0x19d   :  { %v225_v51 = vmul.f32 %v224_v50, %v212_v37 }
 0x19f   :  { %v226_v52 = vadd.f32 1e-05, %v225_v51 }
 0x1a1   :  { %1556 = vrsqrt.f32 %v226_v52  ;;  %vm233_vm4 = vweird.f32 %v226_v52 }
 0x1a7   :  { %v1557_v53 = vpop.eup %1556 }
 0x1a8   :  { %v228_v54 = vmul.f32 %v1557_v53, %v226_v52  ;;  %vm234_vm3 = vweird.f32 %v1557_v53 }
 0x1a9   :  { %vm235_vm5 = vmor %vm233_vm4, %vm234_vm3 }
 0x1aa   :  { %v229_v55 = vmul.f32 %v1557_v53, %v228_v54 }
 0x1ac   :  { %v230_v56 = vmul.f32 0.5, %v229_v55 }
 0x1ae   :  { %v231_v57 = vsub.f32 1.5, %v230_v56 }
 0x1b0   :  { %v232_v58 = vmul.f32 %v1557_v53, %v231_v57 }
 0x1b2   :  { %v236_v60 = vsel %vm235_vm5, %v1557_v53, %v232_v58  ;;  %v250_v63 = vpop.permute.xlu1 %249 }
 0x1b3   :  { %v238_v61 = vmul.f32 %v237_v59, %v236_v60 }
 0x1b5   :  { %241 = vperm.xlu2 %1552, %v238_v61  }
 0x20f   :  { %v242_v62 = vpop.permute.xlu2 %241 }
 0x210   :  { %v244_v0 = vmul.f32 %v242_v62, %v214_v42  ;;  %v245_v1 = vmul.f32 %v242_v62, %v215_v41 }
 0x212   :  { %v1819_v2 = vadd.f32 %v250_v63, %v244_v0  ;;  %v1821_v3 = vadd.f32 %v250_v63, %v245_v1 }
 0x213   :  { %1685 = dma.done.wait [#allocation4], 40960 }
 0x214   :  { %1686 = vsyncadd [#allocation4], 4294926336  ;;  %v336_v4 = vld [vmem:[#allocation2 + $0x260] sm:$0xff]  ;;  %v337_v5 = vld [vmem:[#allocation2 + $0x268] sm:$0xff]  ;;  %v342_v62 = vrot.slane %v1819_v2, 1  ;;  %vm343_vm6 = vcmask 1041409  }
 0x215   :  { %v338_v6 = vld [vmem:[#allocation2 + $0x270] sm:$0xff]  ;;  %353 = vmatpush.msrb.mxu2 %v336_v4  ;;  %373 = vmatpush.msrb.mxu3 %v337_v5  ;;  %v339_v7 = vld [vmem:[#allocation2 + $0x278] sm:$0xff]  ;;  %v332_v8 = vld [vmem:[#allocation2 + $0x240] sm:$0xff] }
 0x216   :  { %v333_v9 = vld [vmem:[#allocation2 + $0x248] sm:$0xff]  ;;  %393 = vmatpush.msrb.mxu0 %v338_v6  ;;  %413 = vmatpush.msrb.mxu1 %v339_v7  ;;  %v334_v10 = vld [vmem:[#allocation2 + $0x250] sm:$0xff]  ;;  %v335_v11 = vld [vmem:[#allocation2 + $0x258] sm:$0xff]  ;;  %v344_v7 = vsel %vm343_vm6, %v1821_v3, %v342_v62 }
 0x217   :  { %v328_v12 = vld [vmem:[#allocation2 + $0x220] sm:$0xff]  ;;  %354 = vmatpush.msrb.mxu2 %v332_v8  ;;  %374 = vmatpush.msrb.mxu3 %v333_v9  ;;  %v329_v13 = vld [vmem:[#allocation2 + $0x228] sm:$0xff]  ;;  %v330_v14 = vld [vmem:[#allocation2 + $0x230] sm:$0xff] }
 0x218   :  { %v331_v15 = vld [vmem:[#allocation2 + $0x238] sm:$0xff]  ;;  %394 = vmatpush.msrb.mxu0 %v334_v10  ;;  %414 = vmatpush.msrb.mxu1 %v335_v11  ;;  %v324_v16 = vld [vmem:[#allocation2 + $0x200] sm:$0xff]  ;;  %v325_v17 = vld [vmem:[#allocation2 + $0x208] sm:$0xff] }
 0x219   :  { %355 = vmatpush.msrb.mxu2 %v328_v12  ;;  %375 = vmatpush.msrb.mxu3 %v329_v13  ;;  %v326_v18 = vld [vmem:[#allocation2 + $0x210] sm:$0xff]  ;;  %v327_v19 = vld [vmem:[#allocation2 + $0x218] sm:$0xff]  ;;  %v320_v20 = vld [vmem:[#allocation2 + $0x1e0] sm:$0xff] }
 0x21a   :  { %395 = vmatpush.msrb.mxu0 %v330_v14  ;;  %415 = vmatpush.msrb.mxu1 %v331_v15  ;;  %v321_v21 = vld [vmem:[#allocation2 + $0x1e8] sm:$0xff]  ;;  %v322_v22 = vld [vmem:[#allocation2 + $0x1f0] sm:$0xff]  ;;  %v323_v23 = vld [vmem:[#allocation2 + $0x1f8] sm:$0xff] }
 0x21b   :  { %356 = vmatpush.msrb.mxu2 %v324_v16  ;;  %376 = vmatpush.msrb.mxu3 %v325_v17  ;;  %v316_v24 = vld [vmem:[#allocation2 + $0x1c0] sm:$0xff]  ;;  %v317_v25 = vld [vmem:[#allocation2 + $0x1c8] sm:$0xff]  ;;  %v318_v26 = vld [vmem:[#allocation2 + $0x1d0] sm:$0xff] }
 0x21c   :  { %396 = vmatpush.msrb.mxu0 %v326_v18  ;;  %416 = vmatpush.msrb.mxu1 %v327_v19  ;;  %v319_v27 = vld [vmem:[#allocation2 + $0x1d8] sm:$0xff]  ;;  %v312_v28 = vld [vmem:[#allocation2 + $0x1a0] sm:$0xff]  ;;  %v313_v29 = vld [vmem:[#allocation2 + $0x1a8] sm:$0xff] }
 0x21d   :  { %357 = vmatpush.msrb.mxu2 %v320_v20  ;;  %377 = vmatpush.msrb.mxu3 %v321_v21  ;;  %v314_v30 = vld [vmem:[#allocation2 + $0x1b0] sm:$0xff]  ;;  %v315_v31 = vld [vmem:[#allocation2 + $0x1b8] sm:$0xff]  ;;  %v308_v32 = vld [vmem:[#allocation2 + $0x180] sm:$0xff]  ;;  %v427_v20 = vrot.slane %v1821_v3, 7 }
 0x21e   :  { %397 = vmatpush.msrb.mxu0 %v322_v22  ;;  %417 = vmatpush.msrb.mxu1 %v323_v23  ;;  %v309_v33 = vld [vmem:[#allocation2 + $0x188] sm:$0xff]  ;;  %v310_v34 = vld [vmem:[#allocation2 + $0x190] sm:$0xff]  ;;  %v311_v35 = vld [vmem:[#allocation2 + $0x198] sm:$0xff] }
 0x21f   :  { %358 = vmatpush.msrb.mxu2 %v316_v24  ;;  %378 = vmatpush.msrb.mxu3 %v317_v25  ;;  %v304_v36 = vld [vmem:[#allocation2 + $0x160] sm:$0xff]  ;;  %v305_v37 = vld [vmem:[#allocation2 + $0x168] sm:$0xff]  ;;  %v306_v38 = vld [vmem:[#allocation2 + $0x170] sm:$0xff]  ;;  %v428_v25 = vsel %vm343_vm6, %v427_v20, %v1819_v2 }
 0x220   :  { %398 = vmatpush.msrb.mxu0 %v318_v26  ;;  %418 = vmatpush.msrb.mxu1 %v319_v27  ;;  %v307_v39 = vld [vmem:[#allocation2 + $0x178] sm:$0xff]  ;;  %v300_v40 = vld [vmem:[#allocation2 + $0x140] sm:$0xff]  ;;  %v301_v41 = vld [vmem:[#allocation2 + $0x148] sm:$0xff] }
 0x221   :  { %359 = vmatpush.msrb.mxu2 %v312_v28  ;;  %379 = vmatpush.msrb.mxu3 %v313_v29  ;;  %v302_v42 = vld [vmem:[#allocation2 + $0x150] sm:$0xff]  ;;  %v303_v43 = vld [vmem:[#allocation2 + $0x158] sm:$0xff]  ;;  %v295_v44 = vld [vmem:[#allocation2 + $0x120] sm:$0xff] }
 0x222   :  { %399 = vmatpush.msrb.mxu0 %v314_v30  ;;  %419 = vmatpush.msrb.mxu1 %v315_v31  ;;  %v296_v45 = vld [vmem:[#allocation2 + $0x128] sm:$0xff]  ;;  %v297_v46 = vld [vmem:[#allocation2 + $0x130] sm:$0xff]  ;;  %v298_v47 = vld [vmem:[#allocation2 + $0x138] sm:$0xff] }
 0x223   :  { %360 = vmatpush.msrb.mxu2 %v308_v32  ;;  %380 = vmatpush.msrb.mxu3 %v309_v33  ;;  %v291_v48 = vld [vmem:[#allocation2 + $0x100] sm:$0xff]  ;;  %v292_v49 = vld [vmem:[#allocation2 + $0x108] sm:$0xff]  ;;  %v293_v50 = vld [vmem:[#allocation2 + $0x110] sm:$0xff] }
 0x224   :  { %400 = vmatpush.msrb.mxu0 %v310_v34  ;;  %420 = vmatpush.msrb.mxu1 %v311_v35  ;;  %v294_v51 = vld [vmem:[#allocation2 + $0x118] sm:$0xff]  ;;  %v287_v52 = vld [vmem:[#allocation2 + $0xe0] sm:$0xff]  ;;  %v288_v53 = vld [vmem:[#allocation2 + $0xe8] sm:$0xff] }
 0x225   :  { %361 = vmatpush.msrb.mxu2 %v304_v36  ;;  %381 = vmatpush.msrb.mxu3 %v305_v37  ;;  %v289_v54 = vld [vmem:[#allocation2 + $0xf0] sm:$0xff]  ;;  %v290_v55 = vld [vmem:[#allocation2 + $0xf8] sm:$0xff]  ;;  %v283_v56 = vld [vmem:[#allocation2 + $0xc0] sm:$0xff] }
 0x226   :  { %401 = vmatpush.msrb.mxu0 %v306_v38  ;;  %421 = vmatpush.msrb.mxu1 %v307_v39  ;;  %v284_v57 = vld [vmem:[#allocation2 + $0xc8] sm:$0xff]  ;;  %v285_v58 = vld [vmem:[#allocation2 + $0xd0] sm:$0xff]  ;;  %v286_v59 = vld [vmem:[#allocation2 + $0xd8] sm:$0xff] }
 0x227   :  { %362 = vmatpush.msrb.mxu2 %v300_v40  ;;  %382 = vmatpush.msrb.mxu3 %v301_v41  ;;  %v279_v60 = vld [vmem:[#allocation2 + $0xa0] sm:$0xff]  ;;  %v280_v61 = vld [vmem:[#allocation2 + $0xa8] sm:$0xff]  ;;  %v281_v63 = vld [vmem:[#allocation2 + $0xb0] sm:$0xff] }
 0x228   :  { %402 = vmatpush.msrb.mxu0 %v302_v42  ;;  %422 = vmatpush.msrb.mxu1 %v303_v43  ;;  %v282_v0 = vld [vmem:[#allocation2 + $0xb8] sm:$0xff]  ;;  %v275_v1 = vld [vmem:[#allocation2 + $0x80] sm:$0xff]  ;;  %v276_v4 = vld [vmem:[#allocation2 + $0x88] sm:$0xff] }
 0x229   :  { %437 = vmatpush.msra.mxu2 %v295_v44  ;;  %457 = vmatpush.msra.mxu3 %v296_v45  ;;  %v277_v5 = vld [vmem:[#allocation2 + $0x90] sm:$0xff]  ;;  %v278_v6 = vld [vmem:[#allocation2 + $0x98] sm:$0xff]  ;;  %v271_v8 = vld [vmem:[#allocation2 + $0x60] sm:$0xff] }
 0x22a   :  { %477 = vmatpush.msra.mxu0 %v297_v46  ;;  %497 = vmatpush.msra.mxu1 %v298_v47  ;;  %v272_v9 = vld [vmem:[#allocation2 + $0x68] sm:$0xff]  ;;  %v273_v10 = vld [vmem:[#allocation2 + $0x70] sm:$0xff]  ;;  %v274_v11 = vld [vmem:[#allocation2 + $0x78] sm:$0xff] }
 0x22b   :  { %438 = vmatpush.msra.mxu2 %v291_v48  ;;  %458 = vmatpush.msra.mxu3 %v292_v49  ;;  %v267_v12 = vld [vmem:[#allocation2 + $0x40] sm:$0xff]  ;;  %v268_v13 = vld [vmem:[#allocation2 + $0x48] sm:$0xff]  ;;  %v269_v14 = vld [vmem:[#allocation2 + $0x50] sm:$0xff] }
 0x22c   :  { %478 = vmatpush.msra.mxu0 %v293_v50  ;;  %498 = vmatpush.msra.mxu1 %v294_v51  ;;  %v270_v15 = vld [vmem:[#allocation2 + $0x58] sm:$0xff]  ;;  %v263_v16 = vld [vmem:[#allocation2 + $0x20] sm:$0xff]  ;;  %v264_v17 = vld [vmem:[#allocation2 + $0x28] sm:$0xff] }
 0x22d   :  { %439 = vmatpush.msra.mxu2 %v287_v52  ;;  %459 = vmatpush.msra.mxu3 %v288_v53  ;;  %v265_v18 = vld [vmem:[#allocation2 + $0x30] sm:$0xff]  ;;  %v266_v19 = vld [vmem:[#allocation2 + $0x38] sm:$0xff]  ;;  %v259_v21 = vld [vmem:[#allocation2] sm:$0xff] }
 0x22e   :  { %479 = vmatpush.msra.mxu0 %v289_v54  ;;  %499 = vmatpush.msra.mxu1 %v290_v55  ;;  %v260_v22 = vld [vmem:[#allocation2 + $0x8] sm:$0xff]  ;;  %v261_v23 = vld [vmem:[#allocation2 + $0x10] sm:$0xff]  ;;  %v262_v24 = vld [vmem:[#allocation2 + $0x18] sm:$0xff] }
 0x22f   :  { %440 = vmatpush.msra.mxu2 %v283_v56  ;;  %460 = vmatpush.msra.mxu3 %v284_v57  ;;  %v548_v26 = vld [vmem:[#allocation2 + $0x3a0] sm:$0xff]  ;;  %v549_v27 = vld [vmem:[#allocation2 + $0x3a8] sm:$0xff]  ;;  %v550_v28 = vld [vmem:[#allocation2 + $0x3b0] sm:$0xff] }
 0x230   :  { %480 = vmatpush.msra.mxu0 %v285_v58  ;;  %500 = vmatpush.msra.mxu1 %v286_v59  ;;  %v551_v29 = vld [vmem:[#allocation2 + $0x3b8] sm:$0xff]  ;;  %v544_v30 = vld [vmem:[#allocation2 + $0x380] sm:$0xff]  ;;  %v545_v31 = vld [vmem:[#allocation2 + $0x388] sm:$0xff] }
 0x231   :  { %441 = vmatpush.msra.mxu2 %v279_v60  ;;  %461 = vmatpush.msra.mxu3 %v280_v61  ;;  %v546_v32 = vld [vmem:[#allocation2 + $0x390] sm:$0xff]  ;;  %v547_v33 = vld [vmem:[#allocation2 + $0x398] sm:$0xff]  ;;  %v540_v34 = vld [vmem:[#allocation2 + $0x360] sm:$0xff]  ;;  %v552_v60 = vrot.slane %v1819_v2, 2  ;;  %v553_v61 = vrot.slane %v1821_v3, 1 }
 0x232   :  { %481 = vmatpush.msra.mxu0 %v281_v63  ;;  %501 = vmatpush.msra.mxu1 %v282_v0  ;;  %v541_v35 = vld [vmem:[#allocation2 + $0x368] sm:$0xff]  ;;  %v542_v36 = vld [vmem:[#allocation2 + $0x370] sm:$0xff]  ;;  %v543_v37 = vld [vmem:[#allocation2 + $0x378] sm:$0xff] }
 0x233   :  { %442 = vmatpush.msra.mxu2 %v275_v1  ;;  %462 = vmatpush.msra.mxu3 %v276_v4  ;;  %v536_v38 = vld [vmem:[#allocation2 + $0x340] sm:$0xff]  ;;  %v537_v39 = vld [vmem:[#allocation2 + $0x348] sm:$0xff]  ;;  %v538_v40 = vld [vmem:[#allocation2 + $0x350] sm:$0xff] }
 0x234   :  { %482 = vmatpush.msra.mxu0 %v277_v5  ;;  %502 = vmatpush.msra.mxu1 %v278_v6  ;;  %v539_v41 = vld [vmem:[#allocation2 + $0x358] sm:$0xff]  ;;  %v532_v42 = vld [vmem:[#allocation2 + $0x320] sm:$0xff]  ;;  %v533_v43 = vld [vmem:[#allocation2 + $0x328] sm:$0xff]  ;;  %v554_v6 = vsel %vm343_vm6, %v553_v61, %v552_v60 }
 0x235   :  { %1506 = vmatmul.msk.f32.vlgmr.msrb.gmra.mxu2 %vm198_vm1, %v344_v7  ;;  %1507 = vmatmul.msk.f32.vlgmr.msrb.gmra.mxu3 %vm198_vm1, %v344_v7  ;;  %v534_v44 = vld [vmem:[#allocation2 + $0x330] sm:$0xff]  ;;  %v535_v45 = vld [vmem:[#allocation2 + $0x338] sm:$0xff]  ;;  %v528_v46 = vld [vmem:[#allocation2 + $0x300] sm:$0xff] }
 0x236   :  { %443 = vmatpush.msra.mxu2 %v271_v8  ;;  %463 = vmatpush.msra.mxu3 %v272_v9  ;;  %v529_v47 = vld [vmem:[#allocation2 + $0x308] sm:$0xff]  ;;  %v530_v48 = vld [vmem:[#allocation2 + $0x310] sm:$0xff]  ;;  %v531_v49 = vld [vmem:[#allocation2 + $0x318] sm:$0xff] }
 0x237   :  { %483 = vmatpush.msra.mxu0 %v273_v10  ;;  %503 = vmatpush.msra.mxu1 %v274_v11  ;;  %v524_v50 = vld [vmem:[#allocation2 + $0x2e0] sm:$0xff]  ;;  %v525_v51 = vld [vmem:[#allocation2 + $0x2e8] sm:$0xff]  ;;  %v526_v52 = vld [vmem:[#allocation2 + $0x2f0] sm:$0xff] }
 0x238   :  { %444 = vmatpush.msra.mxu2 %v267_v12  ;;  %464 = vmatpush.msra.mxu3 %v268_v13  ;;  %v527_v53 = vld [vmem:[#allocation2 + $0x2f8] sm:$0xff]  ;;  %v520_v54 = vld [vmem:[#allocation2 + $0x2c0] sm:$0xff]  ;;  %v521_v55 = vld [vmem:[#allocation2 + $0x2c8] sm:$0xff] }
 0x239   :  { %484 = vmatpush.msra.mxu0 %v269_v14  ;;  %504 = vmatpush.msra.mxu1 %v270_v15  ;;  %v522_v56 = vld [vmem:[#allocation2 + $0x2d0] sm:$0xff]  ;;  %v523_v57 = vld [vmem:[#allocation2 + $0x2d8] sm:$0xff]  ;;  %v516_v58 = vld [vmem:[#allocation2 + $0x2a0] sm:$0xff] }
 0x23a   :  { %445 = vmatpush.msra.mxu2 %v263_v16  ;;  %465 = vmatpush.msra.mxu3 %v264_v17  ;;  %v517_v59 = vld [vmem:[#allocation2 + $0x2a8] sm:$0xff]  ;;  %v518_v62 = vld [vmem:[#allocation2 + $0x2b0] sm:$0xff]  ;;  %v519_v63 = vld [vmem:[#allocation2 + $0x2b8] sm:$0xff] }
 0x23b   :  { %485 = vmatpush.msra.mxu0 %v265_v18  ;;  %505 = vmatpush.msra.mxu1 %v266_v19  ;;  %v512_v0 = vld [vmem:[#allocation2 + $0x280] sm:$0xff]  ;;  %v513_v1 = vld [vmem:[#allocation2 + $0x288] sm:$0xff]  ;;  %v514_v4 = vld [vmem:[#allocation2 + $0x290] sm:$0xff] }
 0x23c   :  { %1508 = vmatmul.msk.f32.vlgmr.msrb.gmra.mxu0 %vm198_vm1, %v344_v7  ;;  %1509 = vmatmul.msk.f32.vlgmr.msrb.gmra.mxu1 %vm198_vm1, %v344_v7  ;;  %v515_v5 = vld [vmem:[#allocation2 + $0x298] sm:$0xff]  ;;  %v678_v7 = vld [vmem:[#allocation2 + $0x4e0] sm:$0xff]  ;;  %v679_v8 = vld [vmem:[#allocation2 + $0x4e8] sm:$0xff] }
 0x23d   :  { %446 = vmatpush.msra.mxu2 %v259_v21  ;;  %466 = vmatpush.msra.mxu3 %v260_v22  ;;  %v680_v9 = vld [vmem:[#allocation2 + $0x4f0] sm:$0xff]  ;;  %v681_v10 = vld [vmem:[#allocation2 + $0x4f8] sm:$0xff]  ;;  %v674_v11 = vld [vmem:[#allocation2 + $0x4c0] sm:$0xff] }
 0x23e   :  { %486 = vmatpush.msra.mxu0 %v261_v23  ;;  %506 = vmatpush.msra.mxu1 %v262_v24  ;;  %v675_v12 = vld [vmem:[#allocation2 + $0x4c8] sm:$0xff]  ;;  %v676_v13 = vld [vmem:[#allocation2 + $0x4d0] sm:$0xff]  ;;  %v677_v14 = vld [vmem:[#allocation2 + $0x4d8] sm:$0xff] }
 0x23f   :  { %1510 = vmatmul.msk.f32.vlgmr.msra.gmra.mxu2 %vm198_vm1, %v428_v25  ;;  %1511 = vmatmul.msk.f32.vlgmr.msra.gmra.mxu3 %vm198_vm1, %v428_v25  ;;  %v670_v15 = vld [vmem:[#allocation2 + $0x4a0] sm:$0xff]  ;;  %v671_v16 = vld [vmem:[#allocation2 + $0x4a8] sm:$0xff]  ;;  %v672_v17 = vld [vmem:[#allocation2 + $0x4b0] sm:$0xff] }
 0x240   :  { %563 = vmatpush.msrb.mxu2 %v548_v26  ;;  %583 = vmatpush.msrb.mxu3 %v549_v27  ;;  %v673_v18 = vld [vmem:[#allocation2 + $0x4b8] sm:$0xff]  ;;  %v666_v19 = vld [vmem:[#allocation2 + $0x480] sm:$0xff]  ;;  %v667_v20 = vld [vmem:[#allocation2 + $0x488] sm:$0xff] }
 0x241   :  { %603 = vmatpush.msrb.mxu0 %v550_v28  ;;  %623 = vmatpush.msrb.mxu1 %v551_v29  ;;  %v668_v21 = vld [vmem:[#allocation2 + $0x490] sm:$0xff]  ;;  %v669_v22 = vld [vmem:[#allocation2 + $0x498] sm:$0xff]  ;;  %v662_v23 = vld [vmem:[#allocation2 + $0x460] sm:$0xff] }
 0x242   :  { %564 = vmatpush.msrb.mxu2 %v544_v30  ;;  %584 = vmatpush.msrb.mxu3 %v545_v31  ;;  %v663_v24 = vld [vmem:[#allocation2 + $0x468] sm:$0xff]  ;;  %v665_v26 = vld [vmem:[#allocation2 + $0x478] sm:$0xff]  ;;  %v658_v27 = vld [vmem:[#allocation2 + $0x440] sm:$0xff] }
 0x243   :  { %604 = vmatpush.msrb.mxu0 %v546_v32  ;;  %624 = vmatpush.msrb.mxu1 %v547_v33  ;;  %v659_v28 = vld [vmem:[#allocation2 + $0x448] sm:$0xff]  ;;  %v660_v29 = vld [vmem:[#allocation2 + $0x450] sm:$0xff]  ;;  %v661_v30 = vld [vmem:[#allocation2 + $0x458] sm:$0xff] }
 0x244   :  { %565 = vmatpush.msrb.mxu2 %v540_v34  ;;  %585 = vmatpush.msrb.mxu3 %v541_v35  ;;  %v654_v31 = vld [vmem:[#allocation2 + $0x420] sm:$0xff]  ;;  %v655_v32 = vld [vmem:[#allocation2 + $0x428] sm:$0xff]  ;;  %v656_v33 = vld [vmem:[#allocation2 + $0x430] sm:$0xff] }
 0x245   :  { %605 = vmatpush.msrb.mxu0 %v542_v36  ;;  %625 = vmatpush.msrb.mxu1 %v543_v37  ;;  %v657_v34 = vld [vmem:[#allocation2 + $0x438] sm:$0xff]  ;;  %v650_v35 = vld [vmem:[#allocation2 + $0x400] sm:$0xff]  ;;  %v651_v36 = vld [vmem:[#allocation2 + $0x408] sm:$0xff] }
 0x246   :  { %1512 = vmatmul.msk.f32.vlgmr.msra.gmra.mxu0 %vm198_vm1, %v428_v25  ;;  %1513 = vmatmul.msk.f32.vlgmr.msra.gmra.mxu1 %vm198_vm1, %v428_v25  ;;  %v664_v25 = vld [vmem:[#allocation2 + $0x470] sm:$0xff]  ;;  %v803_v61 = vld [vmem:[#allocation2 + $0x5f8] sm:$0xff] }
 0x247   :  { %566 = vmatpush.msrb.mxu2 %v536_v38  ;;  %586 = vmatpush.msrb.mxu3 %v537_v39  ;;  %v652_v37 = vld [vmem:[#allocation2 + $0x410] sm:$0xff]  ;;  %v653_v38 = vld [vmem:[#allocation2 + $0x418] sm:$0xff]  ;;  %v646_v39 = vld [vmem:[#allocation2 + $0x3e0] sm:$0xff] }
 0x248   :  { %606 = vmatpush.msrb.mxu0 %v538_v40  ;;  %626 = vmatpush.msrb.mxu1 %v539_v41  ;;  %v647_v40 = vld [vmem:[#allocation2 + $0x3e8] sm:$0xff]  ;;  %v682_v41 = vrot.slane %v1819_v2, 3  ;;  %v802_v60 = vld [vmem:[#allocation2 + $0x5f0] sm:$0xff] }
 0x249   :  { %567 = vmatpush.msrb.mxu2 %v532_v42  ;;  %587 = vmatpush.msrb.mxu3 %v533_v43  ;;  %v683_v42 = vrot.slane %v1821_v3, 2  ;;  %v648_v43 = vld [vmem:[#allocation2 + $0x3f0] sm:$0xff] }
 0x24a   :  { %607 = vmatpush.msrb.mxu0 %v534_v44  ;;  %627 = vmatpush.msrb.mxu1 %v535_v45  ;;  %v649_v44 = vld [vmem:[#allocation2 + $0x3f8] sm:$0xff]  ;;  %v642_v45 = vld [vmem:[#allocation2 + $0x3c0] sm:$0xff] }
 0x24b   :  { %568 = vmatpush.msrb.mxu2 %v528_v46  ;;  %588 = vmatpush.msrb.mxu3 %v529_v47  ;;  %v643_v46 = vld [vmem:[#allocation2 + $0x3c8] sm:$0xff]  ;;  %v644_v47 = vld [vmem:[#allocation2 + $0x3d0] sm:$0xff] }
 0x24c   :  { %608 = vmatpush.msrb.mxu0 %v530_v48  ;;  %628 = vmatpush.msrb.mxu1 %v531_v49  ;;  %v645_v48 = vld [vmem:[#allocation2 + $0x3d8] sm:$0xff]  ;;  %v684_v49 = vsel %vm343_vm6, %v683_v42, %v682_v41  ;;  %v932_v41 = vld [vmem:[#allocation2 + $0x730] sm:$0xff] }
 0x24d   :  { %569 = vmatpush.msrb.mxu2 %v524_v50  ;;  %589 = vmatpush.msrb.mxu3 %v525_v51  ;;  %v808_v50 = vld [vmem:[#allocation2 + $0x620] sm:$0xff]  ;;  %v809_v51 = vld [vmem:[#allocation2 + $0x628] sm:$0xff]  ;;  %v933_v42 = vld [vmem:[#allocation2 + $0x738] sm:$0xff] }
 0x24e   :  { %609 = vmatpush.msrb.mxu0 %v526_v52  ;;  %629 = vmatpush.msrb.mxu1 %v527_v53  ;;  %v810_v52 = vld [vmem:[#allocation2 + $0x630] sm:$0xff]  ;;  %v811_v53 = vld [vmem:[#allocation2 + $0x638] sm:$0xff] }
 0x24f   :  { %570 = vmatpush.msrb.mxu2 %v520_v54  ;;  %590 = vmatpush.msrb.mxu3 %v521_v55  ;;  %v804_v54 = vld [vmem:[#allocation2 + $0x600] sm:$0xff]  ;;  %v805_v55 = vld [vmem:[#allocation2 + $0x608] sm:$0xff] }
 0x250   :  { %610 = vmatpush.msrb.mxu0 %v522_v56  ;;  %630 = vmatpush.msrb.mxu1 %v523_v57  ;;  %v806_v56 = vld [vmem:[#allocation2 + $0x610] sm:$0xff]  ;;  %v807_v57 = vld [vmem:[#allocation2 + $0x618] sm:$0xff] }
 0x251   :  { %571 = vmatpush.msrb.mxu2 %v516_v58  ;;  %591 = vmatpush.msrb.mxu3 %v517_v59  ;;  %v800_v58 = vld [vmem:[#allocation2 + $0x5e0] sm:$0xff]  ;;  %v801_v59 = vld [vmem:[#allocation2 + $0x5e8] sm:$0xff] }
 0x252   :  { %611 = vmatpush.msrb.mxu0 %v518_v62  ;;  %631 = vmatpush.msrb.mxu1 %v519_v63  ;;  %v796_v62 = vld [vmem:[#allocation2 + $0x5c0] sm:$0xff]  ;;  %v797_v63 = vld [vmem:[#allocation2 + $0x5c8] sm:$0xff] }
 0x253   :  { %572 = vmatpush.msrb.mxu2 %v512_v0  ;;  %592 = vmatpush.msrb.mxu3 %v513_v1  ;;  %v798_v0 = vld [vmem:[#allocation2 + $0x5d0] sm:$0xff]  ;;  %v799_v1 = vld [vmem:[#allocation2 + $0x5d8] sm:$0xff] }
 0x254   :  { %612 = vmatpush.msrb.mxu0 %v514_v4  ;;  %632 = vmatpush.msrb.mxu1 %v515_v5  ;;  %v792_v4 = vld [vmem:[#allocation2 + $0x5a0] sm:$0xff]  ;;  %v793_v5 = vld [vmem:[#allocation2 + $0x5a8] sm:$0xff] }
 0x255   :  { %1514 = vmatmul.msk.f32.vlgmr.msrb.gmra.mxu2 %vm198_vm1, %v554_v6  ;;  %1515 = vmatmul.msk.f32.vlgmr.msrb.gmra.mxu3 %vm198_vm1, %v554_v6 }
 0x256   :  { %1516 = vmatmul.msk.f32.vlgmr.msrb.gmra.mxu0 %vm198_vm1, %v554_v6  ;;  %1517 = vmatmul.msk.f32.vlgmr.msrb.gmra.mxu1 %vm198_vm1, %v554_v6  ;;  %v794_v6 = vld [vmem:[#allocation2 + $0x5b0] sm:$0xff] }
 0x257   :  { %693 = vmatpush.msra.mxu2 %v678_v7  ;;  %713 = vmatpush.msra.mxu3 %v679_v8  ;;  %v795_v7 = vld [vmem:[#allocation2 + $0x5b8] sm:$0xff]  ;;  %v788_v8 = vld [vmem:[#allocation2 + $0x580] sm:$0xff] }
 0x258   :  { %733 = vmatpush.msra.mxu0 %v680_v9  ;;  %753 = vmatpush.msra.mxu1 %v681_v10  ;;  %v789_v9 = vld [vmem:[#allocation2 + $0x588] sm:$0xff]  ;;  %v790_v10 = vld [vmem:[#allocation2 + $0x590] sm:$0xff] }
 0x259   :  { %694 = vmatpush.msra.mxu2 %v674_v11  ;;  %714 = vmatpush.msra.mxu3 %v675_v12  ;;  %v791_v11 = vld [vmem:[#allocation2 + $0x598] sm:$0xff]  ;;  %v784_v12 = vld [vmem:[#allocation2 + $0x560] sm:$0xff] }
 0x25a   :  { %734 = vmatpush.msra.mxu0 %v676_v13  ;;  %754 = vmatpush.msra.mxu1 %v677_v14  ;;  %v785_v13 = vld [vmem:[#allocation2 + $0x568] sm:$0xff]  ;;  %v786_v14 = vld [vmem:[#allocation2 + $0x570] sm:$0xff] }
 0x25b   :  { %695 = vmatpush.msra.mxu2 %v670_v15  ;;  %715 = vmatpush.msra.mxu3 %v671_v16  ;;  %v787_v15 = vld [vmem:[#allocation2 + $0x578] sm:$0xff]  ;;  %v780_v16 = vld [vmem:[#allocation2 + $0x540] sm:$0xff] }
 0x25c   :  { %735 = vmatpush.msra.mxu0 %v672_v17  ;;  %755 = vmatpush.msra.mxu1 %v673_v18  ;;  %v781_v17 = vld [vmem:[#allocation2 + $0x548] sm:$0xff]  ;;  %v782_v18 = vld [vmem:[#allocation2 + $0x550] sm:$0xff] }
 0x25d   :  { %696 = vmatpush.msra.mxu2 %v666_v19  ;;  %716 = vmatpush.msra.mxu3 %v667_v20  ;;  %v783_v19 = vld [vmem:[#allocation2 + $0x558] sm:$0xff]  ;;  %v776_v20 = vld [vmem:[#allocation2 + $0x520] sm:$0xff] }
 0x25e   :  { %736 = vmatpush.msra.mxu0 %v668_v21  ;;  %756 = vmatpush.msra.mxu1 %v669_v22  ;;  %v777_v21 = vld [vmem:[#allocation2 + $0x528] sm:$0xff]  ;;  %v812_v22 = vrot.slane %v1819_v2, 4 }
 0x25f   :  { %697 = vmatpush.msra.mxu2 %v662_v23  ;;  %717 = vmatpush.msra.mxu3 %v663_v24  ;;  %v813_v23 = vrot.slane %v1821_v3, 3  ;;  %v778_v24 = vld [vmem:[#allocation2 + $0x530] sm:$0xff] }
 0x260   :  { %737 = vmatpush.msra.mxu0 %v664_v25  ;;  %757 = vmatpush.msra.mxu1 %v665_v26  ;;  %v779_v25 = vld [vmem:[#allocation2 + $0x538] sm:$0xff]  ;;  %v772_v26 = vld [vmem:[#allocation2 + $0x500] sm:$0xff] }
 0x261   :  { %698 = vmatpush.msra.mxu2 %v658_v27  ;;  %718 = vmatpush.msra.mxu3 %v659_v28  ;;  %v773_v27 = vld [vmem:[#allocation2 + $0x508] sm:$0xff]  ;;  %v774_v28 = vld [vmem:[#allocation2 + $0x510] sm:$0xff] }
 0x262   :  { %738 = vmatpush.msra.mxu0 %v660_v29  ;;  %758 = vmatpush.msra.mxu1 %v661_v30  ;;  %v775_v29 = vld [vmem:[#allocation2 + $0x518] sm:$0xff]  ;;  %v814_v30 = vsel %vm343_vm6, %v813_v23, %v812_v22  ;;  %v1062_v22 = vld [vmem:[#allocation2 + $0x870] sm:$0xff] }
 0x263   :  { %699 = vmatpush.msra.mxu2 %v654_v31  ;;  %719 = vmatpush.msra.mxu3 %v655_v32  ;;  %v938_v31 = vld [vmem:[#allocation2 + $0x760] sm:$0xff]  ;;  %v939_v32 = vld [vmem:[#allocation2 + $0x768] sm:$0xff]  ;;  %v1063_v23 = vld [vmem:[#allocation2 + $0x878] sm:$0xff] }
 0x264   :  { %739 = vmatpush.msra.mxu0 %v656_v33  ;;  %759 = vmatpush.msra.mxu1 %v657_v34  ;;  %v940_v33 = vld [vmem:[#allocation2 + $0x770] sm:$0xff]  ;;  %v941_v34 = vld [vmem:[#allocation2 + $0x778] sm:$0xff] }
 0x265   :  { %700 = vmatpush.msra.mxu2 %v650_v35  ;;  %720 = vmatpush.msra.mxu3 %v651_v36  ;;  %v934_v35 = vld [vmem:[#allocation2 + $0x740] sm:$0xff]  ;;  %v935_v36 = vld [vmem:[#allocation2 + $0x748] sm:$0xff] }
 0x266   :  { %740 = vmatpush.msra.mxu0 %v652_v37  ;;  %760 = vmatpush.msra.mxu1 %v653_v38  ;;  %v936_v37 = vld [vmem:[#allocation2 + $0x750] sm:$0xff]  ;;  %v937_v38 = vld [vmem:[#allocation2 + $0x758] sm:$0xff] }
 0x267   :  { %701 = vmatpush.msra.mxu2 %v646_v39  ;;  %721 = vmatpush.msra.mxu3 %v647_v40  ;;  %v930_v39 = vld [vmem:[#allocation2 + $0x720] sm:$0xff]  ;;  %v931_v40 = vld [vmem:[#allocation2 + $0x728] sm:$0xff] }
 0x268   :  { %741 = vmatpush.msra.mxu0 %v648_v43  ;;  %761 = vmatpush.msra.mxu1 %v649_v44  ;;  %v926_v43 = vld [vmem:[#allocation2 + $0x700] sm:$0xff]  ;;  %v927_v44 = vld [vmem:[#allocation2 + $0x708] sm:$0xff] }
 0x269   :  { %702 = vmatpush.msra.mxu2 %v642_v45  ;;  %722 = vmatpush.msra.mxu3 %v643_v46  ;;  %v928_v45 = vld [vmem:[#allocation2 + $0x710] sm:$0xff]  ;;  %v929_v46 = vld [vmem:[#allocation2 + $0x718] sm:$0xff] }
 0x26a   :  { %742 = vmatpush.msra.mxu0 %v644_v47  ;;  %762 = vmatpush.msra.mxu1 %v645_v48  ;;  %v922_v47 = vld [vmem:[#allocation2 + $0x6e0] sm:$0xff]  ;;  %v923_v48 = vld [vmem:[#allocation2 + $0x6e8] sm:$0xff] }
 0x26b   :  { %1518 = vmatmul.msk.f32.vlgmr.msra.gmra.mxu2 %vm198_vm1, %v684_v49  ;;  %1519 = vmatmul.msk.f32.vlgmr.msra.gmra.mxu3 %vm198_vm1, %v684_v49 }
 0x26c   :  { %1520 = vmatmul.msk.f32.vlgmr.msra.gmra.mxu0 %vm198_vm1, %v684_v49  ;;  %1521 = vmatmul.msk.f32.vlgmr.msra.gmra.mxu1 %vm198_vm1, %v684_v49  ;;  %v924_v49 = vld [vmem:[#allocation2 + $0x6f0] sm:$0xff] }
 0x26d   :  { %823 = vmatpush.msrb.mxu2 %v808_v50  ;;  %843 = vmatpush.msrb.mxu3 %v809_v51  ;;  %v925_v50 = vld [vmem:[#allocation2 + $0x6f8] sm:$0xff]  ;;  %v918_v51 = vld [vmem:[#allocation2 + $0x6c0] sm:$0xff] }
 0x26e   :  { %863 = vmatpush.msrb.mxu0 %v810_v52  ;;  %883 = vmatpush.msrb.mxu1 %v811_v53  ;;  %v919_v52 = vld [vmem:[#allocation2 + $0x6c8] sm:$0xff]  ;;  %v920_v53 = vld [vmem:[#allocation2 + $0x6d0] sm:$0xff] }
 0x26f   :  { %824 = vmatpush.msrb.mxu2 %v804_v54  ;;  %844 = vmatpush.msrb.mxu3 %v805_v55  ;;  %v921_v54 = vld [vmem:[#allocation2 + $0x6d8] sm:$0xff]  ;;  %v914_v55 = vld [vmem:[#allocation2 + $0x6a0] sm:$0xff] }
 0x270   :  { %864 = vmatpush.msrb.mxu0 %v806_v56  ;;  %884 = vmatpush.msrb.mxu1 %v807_v57  ;;  %v915_v56 = vld [vmem:[#allocation2 + $0x6a8] sm:$0xff]  ;;  %v916_v57 = vld [vmem:[#allocation2 + $0x6b0] sm:$0xff] }
 0x271   :  { %825 = vmatpush.msrb.mxu2 %v800_v58  ;;  %845 = vmatpush.msrb.mxu3 %v801_v59  ;;  %v917_v58 = vld [vmem:[#allocation2 + $0x6b8] sm:$0xff]  ;;  %v910_v59 = vld [vmem:[#allocation2 + $0x680] sm:$0xff] }
 0x272   :  { %865 = vmatpush.msrb.mxu0 %v802_v60  ;;  %885 = vmatpush.msrb.mxu1 %v803_v61  ;;  %v911_v60 = vld [vmem:[#allocation2 + $0x688] sm:$0xff]  ;;  %v912_v61 = vld [vmem:[#allocation2 + $0x690] sm:$0xff] }
 0x273   :  { %826 = vmatpush.msrb.mxu2 %v796_v62  ;;  %846 = vmatpush.msrb.mxu3 %v797_v63  ;;  %v913_v62 = vld [vmem:[#allocation2 + $0x698] sm:$0xff]  ;;  %v906_v63 = vld [vmem:[#allocation2 + $0x660] sm:$0xff] }
 0x274   :  { %866 = vmatpush.msrb.mxu0 %v798_v0  ;;  %886 = vmatpush.msrb.mxu1 %v799_v1  ;;  %v907_v0 = vld [vmem:[#allocation2 + $0x668] sm:$0xff]  ;;  %v942_v1 = vrot.slane %v1819_v2, 5 }
 0x275   :  { %827 = vmatpush.msrb.mxu2 %v792_v4  ;;  %847 = vmatpush.msrb.mxu3 %v793_v5  ;;  %v943_v4 = vrot.slane %v1821_v3, 4  ;;  %v908_v5 = vld [vmem:[#allocation2 + $0x670] sm:$0xff] }
 0x276   :  { %867 = vmatpush.msrb.mxu0 %v794_v6  ;;  %887 = vmatpush.msrb.mxu1 %v795_v7  ;;  %v909_v6 = vld [vmem:[#allocation2 + $0x678] sm:$0xff]  ;;  %v902_v7 = vld [vmem:[#allocation2 + $0x640] sm:$0xff] }
 0x277   :  { %828 = vmatpush.msrb.mxu2 %v788_v8  ;;  %848 = vmatpush.msrb.mxu3 %v789_v9  ;;  %v903_v8 = vld [vmem:[#allocation2 + $0x648] sm:$0xff]  ;;  %v904_v9 = vld [vmem:[#allocation2 + $0x650] sm:$0xff] }
 0x278   :  { %868 = vmatpush.msrb.mxu0 %v790_v10  ;;  %888 = vmatpush.msrb.mxu1 %v791_v11  ;;  %v905_v10 = vld [vmem:[#allocation2 + $0x658] sm:$0xff]  ;;  %v944_v11 = vsel %vm343_vm6, %v943_v4, %v942_v1  ;;  %v1192_v1 = vld [vmem:[#allocation2 + $0x9b0] sm:$0xff] }
 0x279   :  { %829 = vmatpush.msrb.mxu2 %v784_v12  ;;  %849 = vmatpush.msrb.mxu3 %v785_v13  ;;  %v1068_v12 = vld [vmem:[#allocation2 + $0x8a0] sm:$0xff]  ;;  %v1069_v13 = vld [vmem:[#allocation2 + $0x8a8] sm:$0xff]  ;;  %v1193_v4 = vld [vmem:[#allocation2 + $0x9b8] sm:$0xff] }
 0x27a   :  { %869 = vmatpush.msrb.mxu0 %v786_v14  ;;  %889 = vmatpush.msrb.mxu1 %v787_v15  ;;  %v1070_v14 = vld [vmem:[#allocation2 + $0x8b0] sm:$0xff]  ;;  %v1071_v15 = vld [vmem:[#allocation2 + $0x8b8] sm:$0xff] }
 0x27b   :  { %830 = vmatpush.msrb.mxu2 %v780_v16  ;;  %850 = vmatpush.msrb.mxu3 %v781_v17  ;;  %v1064_v16 = vld [vmem:[#allocation2 + $0x880] sm:$0xff]  ;;  %v1065_v17 = vld [vmem:[#allocation2 + $0x888] sm:$0xff] }
 0x27c   :  { %870 = vmatpush.msrb.mxu0 %v782_v18  ;;  %890 = vmatpush.msrb.mxu1 %v783_v19  ;;  %v1066_v18 = vld [vmem:[#allocation2 + $0x890] sm:$0xff]  ;;  %v1067_v19 = vld [vmem:[#allocation2 + $0x898] sm:$0xff] }
 0x27d   :  { %831 = vmatpush.msrb.mxu2 %v776_v20  ;;  %851 = vmatpush.msrb.mxu3 %v777_v21  ;;  %v1060_v20 = vld [vmem:[#allocation2 + $0x860] sm:$0xff]  ;;  %v1061_v21 = vld [vmem:[#allocation2 + $0x868] sm:$0xff] }
 0x27e   :  { %871 = vmatpush.msrb.mxu0 %v778_v24  ;;  %891 = vmatpush.msrb.mxu1 %v779_v25  ;;  %v1056_v24 = vld [vmem:[#allocation2 + $0x840] sm:$0xff]  ;;  %v1057_v25 = vld [vmem:[#allocation2 + $0x848] sm:$0xff] }
 0x27f   :  { %832 = vmatpush.msrb.mxu2 %v772_v26  ;;  %852 = vmatpush.msrb.mxu3 %v773_v27  ;;  %v1058_v26 = vld [vmem:[#allocation2 + $0x850] sm:$0xff]  ;;  %v1059_v27 = vld [vmem:[#allocation2 + $0x858] sm:$0xff] }
 0x280   :  { %872 = vmatpush.msrb.mxu0 %v774_v28  ;;  %892 = vmatpush.msrb.mxu1 %v775_v29  ;;  %v1052_v28 = vld [vmem:[#allocation2 + $0x820] sm:$0xff]  ;;  %v1053_v29 = vld [vmem:[#allocation2 + $0x828] sm:$0xff] }
 0x281   :  { %1522 = vmatmul.msk.f32.vlgmr.msrb.gmra.mxu2 %vm198_vm1, %v814_v30  ;;  %1523 = vmatmul.msk.f32.vlgmr.msrb.gmra.mxu3 %vm198_vm1, %v814_v30 }
 0x282   :  { %1524 = vmatmul.msk.f32.vlgmr.msrb.gmra.mxu0 %vm198_vm1, %v814_v30  ;;  %1525 = vmatmul.msk.f32.vlgmr.msrb.gmra.mxu1 %vm198_vm1, %v814_v30  ;;  %v1054_v30 = vld [vmem:[#allocation2 + $0x830] sm:$0xff] }
 0x283   :  { %953 = vmatpush.msra.mxu2 %v938_v31  ;;  %973 = vmatpush.msra.mxu3 %v939_v32  ;;  %v1055_v31 = vld [vmem:[#allocation2 + $0x838] sm:$0xff]  ;;  %v1048_v32 = vld [vmem:[#allocation2 + $0x800] sm:$0xff] }
 0x284   :  { %993 = vmatpush.msra.mxu0 %v940_v33  ;;  %1013 = vmatpush.msra.mxu1 %v941_v34  ;;  %v1049_v33 = vld [vmem:[#allocation2 + $0x808] sm:$0xff]  ;;  %v1050_v34 = vld [vmem:[#allocation2 + $0x810] sm:$0xff] }
 0x285   :  { %954 = vmatpush.msra.mxu2 %v934_v35  ;;  %974 = vmatpush.msra.mxu3 %v935_v36  ;;  %v1051_v35 = vld [vmem:[#allocation2 + $0x818] sm:$0xff]  ;;  %v1044_v36 = vld [vmem:[#allocation2 + $0x7e0] sm:$0xff] }
 0x286   :  { %994 = vmatpush.msra.mxu0 %v936_v37  ;;  %1014 = vmatpush.msra.mxu1 %v937_v38  ;;  %v1045_v37 = vld [vmem:[#allocation2 + $0x7e8] sm:$0xff]  ;;  %v1046_v38 = vld [vmem:[#allocation2 + $0x7f0] sm:$0xff] }
 0x287   :  { %955 = vmatpush.msra.mxu2 %v930_v39  ;;  %975 = vmatpush.msra.mxu3 %v931_v40  ;;  %v1047_v39 = vld [vmem:[#allocation2 + $0x7f8] sm:$0xff]  ;;  %v1040_v40 = vld [vmem:[#allocation2 + $0x7c0] sm:$0xff] }
 0x288   :  { %995 = vmatpush.msra.mxu0 %v932_v41  ;;  %1015 = vmatpush.msra.mxu1 %v933_v42  ;;  %v1041_v41 = vld [vmem:[#allocation2 + $0x7c8] sm:$0xff]  ;;  %v1042_v42 = vld [vmem:[#allocation2 + $0x7d0] sm:$0xff] }
 0x289   :  { %956 = vmatpush.msra.mxu2 %v926_v43  ;;  %976 = vmatpush.msra.mxu3 %v927_v44  ;;  %v1043_v43 = vld [vmem:[#allocation2 + $0x7d8] sm:$0xff]  ;;  %v1036_v44 = vld [vmem:[#allocation2 + $0x7a0] sm:$0xff] }
 0x28a   :  { %996 = vmatpush.msra.mxu0 %v928_v45  ;;  %1016 = vmatpush.msra.mxu1 %v929_v46  ;;  %v1037_v45 = vld [vmem:[#allocation2 + $0x7a8] sm:$0xff]  ;;  %v1072_v46 = vrot.slane %v1819_v2, 6 }
 0x28b   :  { %957 = vmatpush.msra.mxu2 %v922_v47  ;;  %977 = vmatpush.msra.mxu3 %v923_v48  ;;  %v1073_v47 = vrot.slane %v1821_v3, 5  ;;  %v1038_v48 = vld [vmem:[#allocation2 + $0x7b0] sm:$0xff] }
 0x28c   :  { %997 = vmatpush.msra.mxu0 %v924_v49  ;;  %1017 = vmatpush.msra.mxu1 %v925_v50  ;;  %v1039_v49 = vld [vmem:[#allocation2 + $0x7b8] sm:$0xff]  ;;  %v1032_v50 = vld [vmem:[#allocation2 + $0x780] sm:$0xff] }
 0x28d   :  { %958 = vmatpush.msra.mxu2 %v918_v51  ;;  %978 = vmatpush.msra.mxu3 %v919_v52  ;;  %v1033_v51 = vld [vmem:[#allocation2 + $0x788] sm:$0xff]  ;;  %v1034_v52 = vld [vmem:[#allocation2 + $0x790] sm:$0xff] }
 0x28e   :  { %998 = vmatpush.msra.mxu0 %v920_v53  ;;  %1018 = vmatpush.msra.mxu1 %v921_v54  ;;  %v1035_v53 = vld [vmem:[#allocation2 + $0x798] sm:$0xff]  ;;  %v1074_v54 = vsel %vm343_vm6, %v1073_v47, %v1072_v46 }
 0x28f   :  { %959 = vmatpush.msra.mxu2 %v914_v55  ;;  %979 = vmatpush.msra.mxu3 %v915_v56  ;;  %v1198_v55 = vld [vmem:[#allocation2 + $0x9e0] sm:$0xff]  ;;  %v1199_v56 = vld [vmem:[#allocation2 + $0x9e8] sm:$0xff] }
 0x290   :  { %999 = vmatpush.msra.mxu0 %v916_v57  ;;  %1019 = vmatpush.msra.mxu1 %v917_v58  ;;  %v1200_v57 = vld [vmem:[#allocation2 + $0x9f0] sm:$0xff]  ;;  %v1201_v58 = vld [vmem:[#allocation2 + $0x9f8] sm:$0xff] }
 0x291   :  { %960 = vmatpush.msra.mxu2 %v910_v59  ;;  %980 = vmatpush.msra.mxu3 %v911_v60  ;;  %v1194_v59 = vld [vmem:[#allocation2 + $0x9c0] sm:$0xff]  ;;  %v1195_v60 = vld [vmem:[#allocation2 + $0x9c8] sm:$0xff] }
 0x292   :  { %1000 = vmatpush.msra.mxu0 %v912_v61  ;;  %1020 = vmatpush.msra.mxu1 %v913_v62  ;;  %v1196_v61 = vld [vmem:[#allocation2 + $0x9d0] sm:$0xff]  ;;  %v1197_v62 = vld [vmem:[#allocation2 + $0x9d8] sm:$0xff] }
 0x293   :  { %961 = vmatpush.msra.mxu2 %v906_v63  ;;  %981 = vmatpush.msra.mxu3 %v907_v0  ;;  %v1190_v63 = vld [vmem:[#allocation2 + $0x9a0] sm:$0xff]  ;;  %v1191_v0 = vld [vmem:[#allocation2 + $0x9a8] sm:$0xff] }
 0x294   :  { %1001 = vmatpush.msra.mxu0 %v908_v5  ;;  %1021 = vmatpush.msra.mxu1 %v909_v6  ;;  %v1186_v5 = vld [vmem:[#allocation2 + $0x980] sm:$0xff]  ;;  %v1187_v6 = vld [vmem:[#allocation2 + $0x988] sm:$0xff] }
 0x295   :  { %962 = vmatpush.msra.mxu2 %v902_v7  ;;  %982 = vmatpush.msra.mxu3 %v903_v8  ;;  %v1188_v7 = vld [vmem:[#allocation2 + $0x990] sm:$0xff]  ;;  %v1189_v8 = vld [vmem:[#allocation2 + $0x998] sm:$0xff] }
 0x296   :  { %1002 = vmatpush.msra.mxu0 %v904_v9  ;;  %1022 = vmatpush.msra.mxu1 %v905_v10  ;;  %v1182_v9 = vld [vmem:[#allocation2 + $0x960] sm:$0xff]  ;;  %v1183_v10 = vld [vmem:[#allocation2 + $0x968] sm:$0xff] }
 0x297   :  { %1526 = vmatmul.msk.f32.vlgmr.msra.gmra.mxu2 %vm198_vm1, %v944_v11  ;;  %1527 = vmatmul.msk.f32.vlgmr.msra.gmra.mxu3 %vm198_vm1, %v944_v11 }
 0x298   :  { %1528 = vmatmul.msk.f32.vlgmr.msra.gmra.mxu0 %vm198_vm1, %v944_v11  ;;  %1529 = vmatmul.msk.f32.vlgmr.msra.gmra.mxu1 %vm198_vm1, %v944_v11  ;;  %v1184_v11 = vld [vmem:[#allocation2 + $0x970] sm:$0xff] }
 0x299   :  { %1083 = vmatpush.msrb.mxu2 %v1068_v12  ;;  %1103 = vmatpush.msrb.mxu3 %v1069_v13  ;;  %v1185_v12 = vld [vmem:[#allocation2 + $0x978] sm:$0xff]  ;;  %v1178_v13 = vld [vmem:[#allocation2 + $0x940] sm:$0xff] }
 0x29a   :  { %1123 = vmatpush.msrb.mxu0 %v1070_v14  ;;  %1143 = vmatpush.msrb.mxu1 %v1071_v15  ;;  %v1179_v14 = vld [vmem:[#allocation2 + $0x948] sm:$0xff]  ;;  %v1180_v15 = vld [vmem:[#allocation2 + $0x950] sm:$0xff] }
 0x29b   :  { %1084 = vmatpush.msrb.mxu2 %v1064_v16  ;;  %1104 = vmatpush.msrb.mxu3 %v1065_v17  ;;  %v1181_v16 = vld [vmem:[#allocation2 + $0x958] sm:$0xff]  ;;  %v1174_v17 = vld [vmem:[#allocation2 + $0x920] sm:$0xff] }
 0x29c   :  { %1124 = vmatpush.msrb.mxu0 %v1066_v18  ;;  %1144 = vmatpush.msrb.mxu1 %v1067_v19  ;;  %v1175_v18 = vld [vmem:[#allocation2 + $0x928] sm:$0xff]  ;;  %v1176_v19 = vld [vmem:[#allocation2 + $0x930] sm:$0xff] }
 0x29d   :  { %1085 = vmatpush.msrb.mxu2 %v1060_v20  ;;  %1105 = vmatpush.msrb.mxu3 %v1061_v21  ;;  %v1177_v20 = vld [vmem:[#allocation2 + $0x938] sm:$0xff]  ;;  %v1170_v21 = vld [vmem:[#allocation2 + $0x900] sm:$0xff] }
 0x29e   :  { %1125 = vmatpush.msrb.mxu0 %v1062_v22  ;;  %1145 = vmatpush.msrb.mxu1 %v1063_v23  ;;  %v1171_v22 = vld [vmem:[#allocation2 + $0x908] sm:$0xff]  ;;  %v1172_v23 = vld [vmem:[#allocation2 + $0x910] sm:$0xff] }
 0x29f   :  { %1086 = vmatpush.msrb.mxu2 %v1056_v24  ;;  %1106 = vmatpush.msrb.mxu3 %v1057_v25  ;;  %v1173_v24 = vld [vmem:[#allocation2 + $0x918] sm:$0xff]  ;;  %v1166_v25 = vld [vmem:[#allocation2 + $0x8e0] sm:$0xff] }
 0x2a0   :  { %1126 = vmatpush.msrb.mxu0 %v1058_v26  ;;  %1146 = vmatpush.msrb.mxu1 %v1059_v27  ;;  %v1167_v26 = vld [vmem:[#allocation2 + $0x8e8] sm:$0xff]  ;;  %v1202_v27 = vrot.slane %v1819_v2, 7 }
 0x2a1   :  { %1087 = vmatpush.msrb.mxu2 %v1052_v28  ;;  %1107 = vmatpush.msrb.mxu3 %v1053_v29  ;;  %v1203_v28 = vrot.slane %v1821_v3, 6  ;;  %v1168_v29 = vld [vmem:[#allocation2 + $0x8f0] sm:$0xff] }
 0x2a2   :  { %1127 = vmatpush.msrb.mxu0 %v1054_v30  ;;  %1147 = vmatpush.msrb.mxu1 %v1055_v31  ;;  %v1169_v30 = vld [vmem:[#allocation2 + $0x8f8] sm:$0xff]  ;;  %v1162_v31 = vld [vmem:[#allocation2 + $0x8c0] sm:$0xff] }
 0x2a3   :  { %1088 = vmatpush.msrb.mxu2 %v1048_v32  ;;  %1108 = vmatpush.msrb.mxu3 %v1049_v33  ;;  %v1163_v32 = vld [vmem:[#allocation2 + $0x8c8] sm:$0xff]  ;;  %v1164_v33 = vld [vmem:[#allocation2 + $0x8d0] sm:$0xff] }
 0x2a4   :  { %1128 = vmatpush.msrb.mxu0 %v1050_v34  ;;  %1148 = vmatpush.msrb.mxu1 %v1051_v35  ;;  %v1165_v34 = vld [vmem:[#allocation2 + $0x8d8] sm:$0xff]  ;;  %v1204_v35 = vsel %vm343_vm6, %v1203_v28, %v1202_v27 }
 0x2a5   :  { %1089 = vmatpush.msrb.mxu2 %v1044_v36  ;;  %1109 = vmatpush.msrb.mxu3 %v1045_v37 }
 0x2a6   :  { %1129 = vmatpush.msrb.mxu0 %v1046_v38  ;;  %1149 = vmatpush.msrb.mxu1 %v1047_v39 }
 0x2a7   :  { %1090 = vmatpush.msrb.mxu2 %v1040_v40  ;;  %1110 = vmatpush.msrb.mxu3 %v1041_v41 }
 0x2a8   :  { %1130 = vmatpush.msrb.mxu0 %v1042_v42  ;;  %1150 = vmatpush.msrb.mxu1 %v1043_v43 }
 0x2a9   :  { %1091 = vmatpush.msrb.mxu2 %v1036_v44  ;;  %1111 = vmatpush.msrb.mxu3 %v1037_v45 }
 0x2aa   :  { %1131 = vmatpush.msrb.mxu0 %v1038_v48  ;;  %1151 = vmatpush.msrb.mxu1 %v1039_v49 }
 0x2ab   :  { %1092 = vmatpush.msrb.mxu2 %v1032_v50  ;;  %1112 = vmatpush.msrb.mxu3 %v1033_v51 }
 0x2ac   :  { %1132 = vmatpush.msrb.mxu0 %v1034_v52  ;;  %1152 = vmatpush.msrb.mxu1 %v1035_v53 }
 0x2ad   :  { %1530 = vmatmul.msk.f32.vlgmr.msrb.gmra.mxu2 %vm198_vm1, %v1074_v54  ;;  %1531 = vmatmul.msk.f32.vlgmr.msrb.gmra.mxu3 %vm198_vm1, %v1074_v54 }
 0x2ae   :  { %1532 = vmatmul.msk.f32.vlgmr.msrb.gmra.mxu0 %vm198_vm1, %v1074_v54  ;;  %1533 = vmatmul.msk.f32.vlgmr.msrb.gmra.mxu1 %vm198_vm1, %v1074_v54 }
 0x2af   :  { %1213 = vmatpush.msra.mxu2 %v1198_v55  ;;  %1233 = vmatpush.msra.mxu3 %v1199_v56 }
 0x2b0   :  { %1253 = vmatpush.msra.mxu0 %v1200_v57  ;;  %1273 = vmatpush.msra.mxu1 %v1201_v58 }
 0x2b1   :  { %1214 = vmatpush.msra.mxu2 %v1194_v59  ;;  %1234 = vmatpush.msra.mxu3 %v1195_v60 }
 0x2b2   :  { %1254 = vmatpush.msra.mxu0 %v1196_v61  ;;  %1274 = vmatpush.msra.mxu1 %v1197_v62 }
 0x2b3   :  { %1215 = vmatpush.msra.mxu2 %v1190_v63  ;;  %1235 = vmatpush.msra.mxu3 %v1191_v0 }
 0x2b4   :  { %1255 = vmatpush.msra.mxu0 %v1192_v1  ;;  %1275 = vmatpush.msra.mxu1 %v1193_v4 }
 0x2b5   :  { %1216 = vmatpush.msra.mxu2 %v1186_v5  ;;  %1236 = vmatpush.msra.mxu3 %v1187_v6 }
 0x2b6   :  { %1256 = vmatpush.msra.mxu0 %v1188_v7  ;;  %1276 = vmatpush.msra.mxu1 %v1189_v8 }
 0x2b7   :  { %1217 = vmatpush.msra.mxu2 %v1182_v9  ;;  %1237 = vmatpush.msra.mxu3 %v1183_v10  ;;  %v1291_v10 = vld [vmem:[#allocation6] sm:$0xf] }
 0x2b8   :  { %1257 = vmatpush.msra.mxu0 %v1184_v11  ;;  %1277 = vmatpush.msra.mxu1 %v1185_v12  ;;  %v364_v36 = vpop.f32.mrf.mxu2  ;;  %v384_v37 = vpop.f32.mrf.mxu3 }
 0x2b9   :  { %1218 = vmatpush.msra.mxu2 %v1178_v13  ;;  %1238 = vmatpush.msra.mxu3 %v1179_v14  ;;  %v404_v2 = vpop.f32.mrf.mxu0  ;;  %v424_v3 = vpop.f32.mrf.mxu1 }
 0x2ba   :  { %1258 = vmatpush.msra.mxu0 %v1180_v15  ;;  %1278 = vmatpush.msra.mxu1 %v1181_v16 }
 0x2bb   :  { %1219 = vmatpush.msra.mxu2 %v1174_v17  ;;  %1239 = vmatpush.msra.mxu3 %v1175_v18 }
 0x2bc   :  { %1259 = vmatpush.msra.mxu0 %v1176_v19  ;;  %1279 = vmatpush.msra.mxu1 %v1177_v20  ;;  %v1295_v19 = vperm.slane %v1291_v10, 2  ;;  %v1296_v20 = vperm.slane %v1291_v10, 3 }
 0x2bd   :  { %1220 = vmatpush.msra.mxu2 %v1170_v21  ;;  %1240 = vmatpush.msra.mxu3 %v1171_v22 }
 0x2be   :  { %1260 = vmatpush.msra.mxu0 %v1172_v23  ;;  %1280 = vmatpush.msra.mxu1 %v1173_v24 }
 0x2bf   :  { %1221 = vmatpush.msra.mxu2 %v1166_v25  ;;  %1241 = vmatpush.msra.mxu3 %v1167_v26 }
 0x2c0   :  { %1261 = vmatpush.msra.mxu0 %v1168_v29  ;;  %1281 = vmatpush.msra.mxu1 %v1169_v30 }
 0x2c1   :  { %1222 = vmatpush.msra.mxu2 %v1162_v31  ;;  %1242 = vmatpush.msra.mxu3 %v1163_v32 }
 0x2c2   :  { %1262 = vmatpush.msra.mxu0 %v1164_v33  ;;  %1282 = vmatpush.msra.mxu1 %v1165_v34  ;;  %v448_v40 = vpop.f32.mrf.mxu2  ;;  %v468_v41 = vpop.f32.mrf.mxu3  ;;  %v1293_v33 = vperm.slane %v1291_v10, 0  ;;  %v1294_v34 = vperm.slane %v1291_v10, 1 }
 0x2c3   :  { %1534 = vmatmul.msk.f32.vlgmr.msra.gmra.mxu2 %vm198_vm1, %v1204_v35  ;;  %1535 = vmatmul.msk.f32.vlgmr.msra.gmra.mxu3 %vm198_vm1, %v1204_v35  ;;  %v488_v38 = vpop.f32.mrf.mxu0  ;;  %v508_v39 = vpop.f32.mrf.mxu1  ;;  %v449_v4 = vadd.f32 %v448_v40, %v364_v36  ;;  %v469_v5 = vadd.f32 %v468_v41, %v384_v37 }
 0x2c4   :  { %1536 = vmatmul.msk.f32.vlgmr.msra.gmra.mxu0 %vm198_vm1, %v1204_v35  ;;  %1537 = vmatmul.msk.f32.vlgmr.msra.gmra.mxu1 %vm198_vm1, %v1204_v35  ;;  %v489_v56 = vadd.f32 %v488_v38, %v404_v2  ;;  %v509_v57 = vadd.f32 %v508_v39, %v424_v3 }
 0x2d3   :  { %v614_v42 = vpop.f32.mrf.mxu0  ;;  %v634_v43 = vpop.f32.mrf.mxu1 }
 0x2d4   :  { %v639_v60 = vadd.f32 %v614_v42, %v489_v56  ;;  %v640_v61 = vadd.f32 %v634_v43, %v509_v57 }
 0x2d8   :  { %v574_v44 = vpop.f32.mrf.mxu2  ;;  %v594_v45 = vpop.f32.mrf.mxu3 }
 0x2d9   :  { %v637_v8 = vadd.f32 %v574_v44, %v449_v4  ;;  %v638_v9 = vadd.f32 %v594_v45, %v469_v5 }
 0x2e9   :  { %v744_v46 = vpop.f32.mrf.mxu0  ;;  %v764_v47 = vpop.f32.mrf.mxu1 }
 0x2ea   :  { %v769_v0 = vadd.f32 %v744_v46, %v639_v60  ;;  %v770_v1 = vadd.f32 %v764_v47, %v640_v61 }
 0x2ee   :  { %v704_v48 = vpop.f32.mrf.mxu2  ;;  %v724_v49 = vpop.f32.mrf.mxu3 }
 0x2ef   :  { %v767_v15 = vadd.f32 %v704_v48, %v637_v8  ;;  %v768_v16 = vadd.f32 %v724_v49, %v638_v9 }
 0x2ff   :  { %v874_v50 = vpop.f32.mrf.mxu0  ;;  %v894_v51 = vpop.f32.mrf.mxu1 }
 0x300   :  { %v899_v6 = vadd.f32 %v874_v50, %v769_v0  ;;  %v900_v7 = vadd.f32 %v894_v51, %v770_v1 }
 0x304   :  { %v834_v52 = vpop.f32.mrf.mxu2  ;;  %v854_v53 = vpop.f32.mrf.mxu3 }
 0x305   :  { %v897_v21 = vadd.f32 %v834_v52, %v767_v15  ;;  %v898_v22 = vadd.f32 %v854_v53, %v768_v16 }
 0x315   :  { %v1004_v54 = vpop.f32.mrf.mxu0  ;;  %v1024_v55 = vpop.f32.mrf.mxu1 }
 0x316   :  { %v1029_v11 = vadd.f32 %v1004_v54, %v899_v6  ;;  %v1030_v12 = vadd.f32 %v1024_v55, %v900_v7 }
 0x31a   :  { %v964_v58 = vpop.f32.mrf.mxu2  ;;  %v984_v59 = vpop.f32.mrf.mxu3 }
 0x31b   :  { %v1027_v27 = vadd.f32 %v964_v58, %v897_v21  ;;  %v1028_v28 = vadd.f32 %v984_v59, %v898_v22 }
 0x32b   :  { %v1134_v62 = vpop.f32.mrf.mxu0  ;;  %v1154_v63 = vpop.f32.mrf.mxu1 }
 0x32c   :  { %v1159_v17 = vadd.f32 %v1134_v62, %v1029_v11  ;;  %v1160_v18 = vadd.f32 %v1154_v63, %v1030_v12 }
 0x330   :  { %v1094_v13 = vpop.f32.mrf.mxu2  ;;  %v1114_v14 = vpop.f32.mrf.mxu3 }
 0x331   :  { %v1157_v31 = vadd.f32 %v1094_v13, %v1027_v27  ;;  %v1158_v32 = vadd.f32 %v1114_v14, %v1028_v28 }
 0x341   :  { %v1264_v23 = vpop.f32.mrf.mxu0  ;;  %v1284_v24 = vpop.f32.mrf.mxu1 }
 0x342   :  { %v1289_v25 = vadd.f32 %v1264_v23, %v1159_v17  ;;  %v1290_v26 = vadd.f32 %v1284_v24, %v1160_v18 }
 0x344   :  { %v1879_v29 = vadd.f32 %v1295_v19, %v1289_v25  ;;  %v1881_v30 = vadd.f32 %v1296_v20, %v1290_v26 }
 0x346   :  { %v1307_v35 = vmax.f32 %v1879_v29, 0.0  ;;  %v1308_v2 = vmax.f32 %v1881_v30, 0.0  ;;  %v1224_v3 = vpop.f32.mrf.mxu2  ;;  %v1244_v36 = vpop.f32.mrf.mxu3 }
 0x347   :  { %v1287_v37 = vadd.f32 %v1224_v3, %v1157_v31  ;;  %v1288_v38 = vadd.f32 %v1244_v36, %v1158_v32 }
 0x349   :  { %v1885_v39 = vadd.f32 %v1293_v33, %v1287_v37  ;;  %v1887_v40 = vadd.f32 %v1294_v34, %v1288_v38 }
 0x34b   :  { %v1305_v41 = vmax.f32 %v1885_v39, 0.0  ;;  %v1306_v42 = vmax.f32 %v1887_v40, 0.0 }
 0x34c   :  { %1687 = dma.done.wait [#allocation4 + $0x1], 8192 }
 0x34d   :  { %1688 = vsyncadd [#allocation4 + $0x1], 4294959104  ;;  %v1327_v43 = vld [vmem:[#allocation3 + $0x78] sm:$0xff]  ;;  %v1326_v44 = vld [vmem:[#allocation3 + $0x70] sm:$0xff]  ;;  %vm1466_vm7 = vcmask 1041408   ;;  %vm1475_vm8 = vcmask 1024  }
 0x34e   :  { %v1343_v45 = vld [vmem:[#allocation3 + $0xf8] sm:$0xff]  ;;  %1380 = vmatpush.msrb.mxu2 %v1327_v43  ;;  %v1342_v46 = vld [vmem:[#allocation3 + $0xf0] sm:$0xff]  ;;  %v1325_v47 = vld [vmem:[#allocation3 + $0x68] sm:$0xff] }
 0x34f   :  { %1400 = vmatpush.msrb.mxu3 %v1343_v45  ;;  %v1341_v48 = vld [vmem:[#allocation3 + $0xe8] sm:$0xff]  ;;  %v1359_v49 = vld [vmem:[#allocation3 + $0x178] sm:$0xff]  ;;  %v1324_v50 = vld [vmem:[#allocation3 + $0x60] sm:$0xff] }
 0x350   :  { %1381 = vmatpush.msrb.mxu2 %v1326_v44  ;;  %v1340_v51 = vld [vmem:[#allocation3 + $0xe0] sm:$0xff]  ;;  %1420 = vmatpush.msrb.mxu0 %v1359_v49  ;;  %v1358_v52 = vld [vmem:[#allocation3 + $0x170] sm:$0xff]  ;;  %v1323_v53 = vld [vmem:[#allocation3 + $0x58] sm:$0xff] }
 0x351   :  { %1401 = vmatpush.msrb.mxu3 %v1342_v46  ;;  %v1375_v54 = vld [vmem:[#allocation3 + $0x1f8] sm:$0xff]  ;;  %v1357_v56 = vld [vmem:[#allocation3 + $0x168] sm:$0xff]  ;;  %v1374_v57 = vld [vmem:[#allocation3 + $0x1f0] sm:$0xff] }
 0x352   :  { %1382 = vmatpush.msrb.mxu2 %v1325_v47  ;;  %v1339_v55 = vld [vmem:[#allocation3 + $0xd8] sm:$0xff]  ;;  %1421 = vmatpush.msrb.mxu0 %v1358_v52  ;;  %v1356_v58 = vld [vmem:[#allocation3 + $0x160] sm:$0xff]  ;;  %v1373_v59 = vld [vmem:[#allocation3 + $0x1e8] sm:$0xff] }
 0x353   :  { %1402 = vmatpush.msrb.mxu3 %v1341_v48  ;;  %1440 = vmatpush.msrb.mxu1 %v1375_v54  ;;  %v1322_v60 = vld [vmem:[#allocation3 + $0x50] sm:$0xff]  ;;  %v1355_v62 = vld [vmem:[#allocation3 + $0x158] sm:$0xff]  ;;  %v1372_v63 = vld [vmem:[#allocation3 + $0x1e0] sm:$0xff] }
 0x354   :  { %1383 = vmatpush.msrb.mxu2 %v1324_v50  ;;  %v1338_v61 = vld [vmem:[#allocation3 + $0xd0] sm:$0xff]  ;;  %1422 = vmatpush.msrb.mxu0 %v1357_v56  ;;  %v1321_v0 = vld [vmem:[#allocation3 + $0x48] sm:$0xff]  ;;  %v1371_v5 = vld [vmem:[#allocation3 + $0x1d8] sm:$0xff] }
 0x355   :  { %1403 = vmatpush.msrb.mxu3 %v1340_v51  ;;  %1441 = vmatpush.msrb.mxu1 %v1374_v57  ;;  %v1337_v1 = vld [vmem:[#allocation3 + $0xc8] sm:$0xff]  ;;  %v1354_v4 = vld [vmem:[#allocation3 + $0x150] sm:$0xff]  ;;  %v1320_v6 = vld [vmem:[#allocation3 + $0x40] sm:$0xff] }
 0x356   :  { %1384 = vmatpush.msrb.mxu2 %v1323_v53  ;;  %1423 = vmatpush.msrb.mxu0 %v1356_v58  ;;  %v1336_v7 = vld [vmem:[#allocation3 + $0xc0] sm:$0xff]  ;;  %v1353_v8 = vld [vmem:[#allocation3 + $0x148] sm:$0xff]  ;;  %v1370_v9 = vld [vmem:[#allocation3 + $0x1d0] sm:$0xff] }
 0x357   :  { %1404 = vmatpush.msrb.mxu3 %v1339_v55  ;;  %1442 = vmatpush.msrb.mxu1 %v1373_v59  ;;  %v1319_v10 = vld [vmem:[#allocation3 + $0x38] sm:$0xff]  ;;  %v1352_v12 = vld [vmem:[#allocation3 + $0x140] sm:$0xff]  ;;  %v1369_v13 = vld [vmem:[#allocation3 + $0x1c8] sm:$0xff] }
 0x358   :  { %1385 = vmatpush.msrb.mxu2 %v1322_v60  ;;  %1424 = vmatpush.msrb.mxu0 %v1355_v62  ;;  %v1335_v11 = vld [vmem:[#allocation3 + $0xb8] sm:$0xff]  ;;  %v1318_v14 = vld [vmem:[#allocation3 + $0x30] sm:$0xff]  ;;  %v1368_v17 = vld [vmem:[#allocation3 + $0x1c0] sm:$0xff] }
 0x359   :  { %1405 = vmatpush.msrb.mxu3 %v1338_v61  ;;  %1443 = vmatpush.msrb.mxu1 %v1372_v63  ;;  %v1334_v15 = vld [vmem:[#allocation3 + $0xb0] sm:$0xff]  ;;  %v1351_v16 = vld [vmem:[#allocation3 + $0x138] sm:$0xff]  ;;  %v1317_v18 = vld [vmem:[#allocation3 + $0x28] sm:$0xff] }
 0x35a   :  { %1386 = vmatpush.msrb.mxu2 %v1321_v0  ;;  %1425 = vmatpush.msrb.mxu0 %v1354_v4  ;;  %v1333_v19 = vld [vmem:[#allocation3 + $0xa8] sm:$0xff]  ;;  %v1350_v20 = vld [vmem:[#allocation3 + $0x130] sm:$0xff]  ;;  %v1367_v21 = vld [vmem:[#allocation3 + $0x1b8] sm:$0xff] }
 0x35b   :  { %1406 = vmatpush.msrb.mxu3 %v1337_v1  ;;  %1444 = vmatpush.msrb.mxu1 %v1371_v5  ;;  %v1316_v22 = vld [vmem:[#allocation3 + $0x20] sm:$0xff]  ;;  %v1315_v23 = vld [vmem:[#allocation3 + $0x18] sm:$0xff]  ;;  %v1349_v25 = vld [vmem:[#allocation3 + $0x128] sm:$0xff] }
 0x35c   :  { %1387 = vmatpush.msrb.mxu2 %v1320_v6  ;;  %1426 = vmatpush.msrb.mxu0 %v1353_v8  ;;  %v1332_v24 = vld [vmem:[#allocation3 + $0xa0] sm:$0xff]  ;;  %v1366_v26 = vld [vmem:[#allocation3 + $0x1b0] sm:$0xff]  ;;  %v1331_v27 = vld [vmem:[#allocation3 + $0x98] sm:$0xff] }
 0x35d   :  { %1407 = vmatpush.msrb.mxu3 %v1336_v7  ;;  %1445 = vmatpush.msrb.mxu1 %v1370_v9  ;;  %v1348_v28 = vld [vmem:[#allocation3 + $0x120] sm:$0xff]  ;;  %v1365_v31 = vld [vmem:[#allocation3 + $0x1a8] sm:$0xff]  ;;  %v1314_v32 = vld [vmem:[#allocation3 + $0x10] sm:$0xff] }
 0x35e   :  { %1388 = vmatpush.msrb.mxu2 %v1319_v10  ;;  %1427 = vmatpush.msrb.mxu0 %v1352_v12  ;;  %v1330_v33 = vld [vmem:[#allocation3 + $0x90] sm:$0xff]  ;;  %v1347_v34 = vld [vmem:[#allocation3 + $0x118] sm:$0xff]  ;;  %v1364_v3 = vld [vmem:[#allocation3 + $0x1a0] sm:$0xff] }
 0x35f   :  { %1408 = vmatpush.msrb.mxu3 %v1335_v11  ;;  %1446 = vmatpush.msrb.mxu1 %v1369_v13  ;;  %v1313_v36 = vld [vmem:[#allocation3 + $0x8] sm:$0xff]  ;;  %v1346_v38 = vld [vmem:[#allocation3 + $0x110] sm:$0xff]  ;;  %v1363_v43 = vld [vmem:[#allocation3 + $0x198] sm:$0xff] }
 0x360   :  { %1389 = vmatpush.msrb.mxu2 %v1318_v14  ;;  %1428 = vmatpush.msrb.mxu0 %v1351_v16  ;;  %v1329_v37 = vld [vmem:[#allocation3 + $0x88] sm:$0xff]  ;;  %v1312_v44 = vld [vmem:[#allocation3] sm:$0xff]  ;;  %v1362_v47 = vld [vmem:[#allocation3 + $0x190] sm:$0xff] }
 0x361   :  { %1409 = vmatpush.msrb.mxu3 %v1334_v15  ;;  %1447 = vmatpush.msrb.mxu1 %v1368_v17  ;;  %v1328_v45 = vld [vmem:[#allocation3 + $0x80] sm:$0xff]  ;;  %v1345_v46 = vld [vmem:[#allocation3 + $0x108] sm:$0xff] }
 0x362   :  { %1390 = vmatpush.msrb.mxu2 %v1317_v18  ;;  %1429 = vmatpush.msrb.mxu0 %v1350_v20  ;;  %v1344_v48 = vld [vmem:[#allocation3 + $0x100] sm:$0xff]  ;;  %v1361_v49 = vld [vmem:[#allocation3 + $0x188] sm:$0xff] }
 0x363   :  { %1410 = vmatpush.msrb.mxu3 %v1333_v19  ;;  %1448 = vmatpush.msrb.mxu1 %v1367_v21  ;;  %v1360_v50 = vld [vmem:[#allocation3 + $0x180] sm:$0xff] }
 0x364   :  { %1391 = vmatpush.msrb.mxu2 %v1316_v22  ;;  %1430 = vmatpush.msrb.mxu0 %v1349_v25  ;;  %v1558_v51 = vld [vmem:[#allocation8] ss:$0 sm:$0xff]  ;;  %v1559_v56 = vld [vmem:[#allocation10] ss:$0 sm:$0xff]  ;;  %v1560_v29 = vld [vmem:[#allocation5] ss:$0 sm:$0xff] }
 0x365   :  { %1411 = vmatpush.msrb.mxu3 %v1332_v24  ;;  %1449 = vmatpush.msrb.mxu1 %v1366_v26 }
 0x366   :  { %1392 = vmatpush.msrb.mxu2 %v1315_v23  ;;  %1431 = vmatpush.msrb.mxu0 %v1348_v28 }
 0x367   :  { %1412 = vmatpush.msrb.mxu3 %v1331_v27  ;;  %1450 = vmatpush.msrb.mxu1 %v1365_v31 }
 0x368   :  { %1393 = vmatpush.msrb.mxu2 %v1314_v32  ;;  %1432 = vmatpush.msrb.mxu0 %v1347_v34 }
 0x369   :  { %1413 = vmatpush.msrb.mxu3 %v1330_v33  ;;  %1451 = vmatpush.msrb.mxu1 %v1364_v3 }
 0x36a   :  { %1394 = vmatpush.msrb.mxu2 %v1313_v36  ;;  %1433 = vmatpush.msrb.mxu0 %v1346_v38 }
 0x36b   :  { %1414 = vmatpush.msrb.mxu3 %v1329_v37  ;;  %1452 = vmatpush.msrb.mxu1 %v1363_v43 }
 0x36c   :  { %1395 = vmatpush.msrb.mxu2 %v1312_v44  ;;  %1434 = vmatpush.msrb.mxu0 %v1345_v46 }
 0x36d   :  { %1415 = vmatpush.msrb.mxu3 %v1328_v45  ;;  %1396 = vmatmul.f32.vlgmr.msrb.gmra.mxu2 %v1305_v41 }
 0x36e   :  { %1416 = vmatmul.f32.vlgmr.msrb.gmra.mxu3 %v1306_v42  ;;  %1453 = vmatpush.msrb.mxu1 %v1362_v47 }
 0x36f   :  { %1435 = vmatpush.msrb.mxu0 %v1344_v48 }
 0x370   :  { %1454 = vmatpush.msrb.mxu1 %v1361_v49  ;;  %1436 = vmatmul.f32.vlgmr.msrb.gmra.mxu0 %v1307_v35 }
 0x372   :  { %1455 = vmatpush.msrb.mxu1 %v1360_v50 }
 0x373   :  { %1456 = vmatmul.f32.vlgmr.msrb.gmra.mxu1 %v1308_v2 }
 0x3ed   :  { %v1437_v40 = vpop.f32.mrf.mxu0 }
 0x3f0   :  { %v1397_v39 = vpop.f32.mrf.mxu2  ;;  %v1457_v53 = vpop.f32.mrf.mxu1 }
 0x3f1   :  { %v1417_v41 = vpop.f32.mrf.mxu3  ;;  %v1398_v52 = vadd.f32 %v1558_v51, %v1397_v39 }
 0x3f3   :  { %v1418_v42 = vadd.f32 %v1417_v41, %v1398_v52 }
 0x3f5   :  { %v1438_v54 = vadd.f32 %v1437_v40, %v1418_v42 }
 0x3f7   :  { %v1458_v55 = vadd.f32 %v1457_v53, %v1438_v54 }
 0x3f9   :  { %v1460_v57 = vmax.f32 %v1458_v55, 0.0 }
 0x3fb   :  { %v1465_v58 = vmul.f32 %v1559_v56, %v1460_v57 }
 0x3fd   :  { %v1467_v59 = vsel %vm1466_vm7, %v1465_v58, 0.0 }
 0x3fe   :  { %1468 = vadd.xlane.f32.xlu0 %v1467_v59 }
 0x471   :  { %v1469_v35 = vpop.xlane.xlu0 %1468 }
 0x472   :  { %v1474_v30 = vadd.f32 %v1560_v29, %v1469_v35 }
 0x474   :  { %1476 = vst.msk [vmem:[%s1913_s11] sm:$0x3] %vm1475_vm8, %v1474_v30 }
 0x475   :  { %1481 = vsyncpa [#allocation7], 1 }
 0x476   :  { %1482 = vsyncpa [#allocation9], 1 }
 0x477   :  { %1483 = vsyncmov [#allocation4] }
 0x47a   :  { %s1484_s15 = vpop.sfrf %1483 }
 0x47b   :  { %p1538_p0 = scmp.ne.s32.totalorder %s1484_s15, 0 }
 0x47d   :  { %1488 = shalt.err (%p1538_p0)  }
 0x47e   :  { %1490 = vsyncmov [#allocation4 + $0x1] }
 0x481   :  { %s1491_s16 = vpop.sfrf %1490 }
 0x482   :  { %p1539_p1 = scmp.ne.s32.totalorder %s1491_s16, 0 }
 0x484   :  { %1495 = shalt.err (%p1539_p1)  }

</bundles_post_ra>
